<compile_context>
chip_gen: v7x
topology: tpu7x:2x2x1
jax: 0.10.0
libtpu: 0.0.40
codegen_flags: <defaults>
</compile_context>

<pallas_src>
import functools
import numpy as np
import jax
import jax.numpy as jnp
from jax import lax
from jax.experimental import pallas as pl
from jax.experimental.pallas import tpu as pltpu

LANE = 128
SUBLANE = 8
NEG_INF = -1e30


def _round_up(x, m):
    return ((x + m - 1) // m) * m


# ----------------------------------------------------------------------------
# sin-cos positional embedding (numpy, matches the MAE reference helper)
# ----------------------------------------------------------------------------
def get_1d_sincos_pos_embed(embed_dim, length, cls_token=False):
    pos = np.arange(length, dtype=np.float32)
    omega = np.arange(embed_dim // 2, dtype=np.float32) / (embed_dim / 2.0)
    omega = 1.0 / (10000.0 ** omega)
    out = np.einsum("m,d->md", pos, omega)
    emb = np.concatenate([np.sin(out), np.cos(out)], axis=1)
    if cls_token:
        emb = np.concatenate([np.zeros([1, embed_dim], np.float32), emb], axis=0)
    return emb.astype(np.float32)


# ----------------------------------------------------------------------------
# in-kernel helpers (f32 VPU math)
# ----------------------------------------------------------------------------
def _layernorm(v, g, b, eps=1e-5):
    mu = jnp.mean(v, axis=-1, keepdims=True)
    var = jnp.mean(jnp.square(v - mu), axis=-1, keepdims=True)
    return (v - mu) * lax.rsqrt(var + eps) * g + b


def _gelu(v):  # exact (erf) GELU, matching torch.nn.GELU default
    return 0.5 * v * (1.0 + lax.erf(v * np.float32(1.0 / np.sqrt(2.0))))


# ----------------------------------------------------------------------------
# Fused kernel: patch-embed + all transformer blocks + final LN, both branches.
# grid = (branch, depth); residual stream resident in VMEM scratch across depth.
# ----------------------------------------------------------------------------
def pallas_exp3_encoder(patches, cls_pos, params, *, B, P, S, Sp, depth,
                        num_heads, eps=1e-5):
    """patches:(2,B,Sp,Lp) f32  cls_pos:(2,Sp,D) f32  -> (2,B,D) f32 cls tokens."""
    _, _, _, Lp = patches.shape
    nstack, D, threeD = params["qkv_w"].shape
    Hd = params["fc1_w"].shape[-1]
    Dh = D // num_heads
    scale = np.float32(Dh ** -0.5)
    BSp = B * Sp

    def kernel(p_ref, ew_ref, eb_ref, cp_ref,
               ln1g, ln1b, qkvw, qkvb, projw, projb,
               ln2g, ln2b, fc1w, fc1b, fc2w, fc2b,
               lnfg, lnfb, o_ref, x_scr):
        r = pl.program_id(0)
        d = pl.program_id(1)
        idx = r * depth + d                      # per-(branch, layer) weight index

        # ---- patch embed + cls token + pos embed, once per branch ----
        @pl.when(d == 0)
        def _():
            pm = p_ref[0].reshape(BSp, Lp).astype(jnp.bfloat16)
            emb = jnp.dot(pm, ew_ref[0], preferred_element_type=jnp.float32) + eb_ref[0]
            emb = emb.reshape(B, Sp, D)
            rows = lax.broadcasted_iota(jnp.int32, (1, Sp, 1), 1)
            valid = jnp.logical_and(rows >= 1, rows <= P)   # rows 1..P hold real patches
            x_scr[...] = jnp.where(valid, emb, 0.0) + cp_ref[0]

        xx = x_scr[...].reshape(BSp, D)          # residual stream, f32, M = B*Sp

        # ---- pre-LN multi-head self-attention ----
        h = _layernorm(xx, ln1g[idx], ln1b[idx], eps)
        qkv = jnp.dot(h.astype(jnp.bfloat16), qkvw[idx],
                      preferred_element_type=jnp.float32) + qkvb[idx]   # (BSp, 3D) f32
        qkv3 = qkv.reshape(B, Sp, threeD)

        col = lax.broadcasted_iota(jnp.int32, (1, Sp, Sp), 2)
        kmask = jnp.where(col < S, 0.0, NEG_INF).astype(jnp.float32)    # mask padded keys

        pw = projw[idx]
        proj_acc = jnp.zeros((BSp, D), jnp.float32)
        for hh in range(num_heads):              # static head slices; merge folded into proj
            lo = hh * Dh
            qh = qkv3[:, :, lo:lo + Dh]
            kh = qkv3[:, :, D + lo:D + lo + Dh]
            vh = qkv3[:, :, 2 * D + lo:2 * D + lo + Dh]
            s = lax.dot_general(qh, kh, (((2,), (2,)), ((0,), (0,))),
                                preferred_element_type=jnp.float32) * scale + kmask
            s = s - jnp.max(s, axis=-1, keepdims=True)
            p = jnp.exp(s)
            p = p / jnp.sum(p, axis=-1, keepdims=True)                  # exact softmax
            oh = lax.dot_general(p, vh, (((2,), (1,)), ((0,), (0,))),
                                 preferred_element_type=jnp.float32)
            proj_acc = proj_acc + jnp.dot(
                oh.reshape(BSp, Dh).astype(jnp.bfloat16), pw[lo:lo + Dh, :],
                preferred_element_type=jnp.float32)
        xx = xx + proj_acc + projb[idx]

        # ---- pre-LN MLP ----
        h2 = _layernorm(xx, ln2g[idx], ln2b[idx], eps)
        m = _gelu(jnp.dot(h2.astype(jnp.bfloat16), fc1w[idx],
                          preferred_element_type=jnp.float32) + fc1b[idx])
        xx = xx + jnp.dot(m.astype(jnp.bfloat16), fc2w[idx],
                          preferred_element_type=jnp.float32) + fc2b[idx]

        x_scr[...] = xx.reshape(B, Sp, D)

        # ---- final LayerNorm, write only the cls tokens, once per branch ----
        @pl.when(d == pl.num_programs(1) - 1)
        def _():
            cls = xx.reshape(B, Sp, D)[:, 0, :]                         # (B, D)
            o_ref[0] = _layernorm(cls, lnfg[0], lnfb[0], eps)

    def wfull(shp):      # whole stacked weight resident in VMEM (DMA'd once)
        return pl.BlockSpec(shp, lambda r, d: (0,) * len(shp))

    def branch3(shp):    # per-branch tensor, constant across depth
        return pl.BlockSpec(shp, lambda r, d: (r, 0, 0))

    return pl.pallas_call(
        kernel,
        grid=(2, depth),
        in_specs=[
            pl.BlockSpec((1, B, Sp, Lp), lambda r, d: (r, 0, 0, 0)),   # patches
            branch3((1, Lp, D)),                                        # embed_w (bf16)
            branch3((1, 1, D)),                                         # embed_b
            branch3((1, Sp, D)),                                        # cls + pos
            wfull((nstack, 1, D)), wfull((nstack, 1, D)),               # ln1 g/b
            wfull((nstack, D, threeD)), wfull((nstack, 1, threeD)),     # qkv w/b
            wfull((nstack, D, D)), wfull((nstack, 1, D)),               # proj w/b
            wfull((nstack, 1, D)), wfull((nstack, 1, D)),               # ln2 g/b
            wfull((nstack, D, Hd)), wfull((nstack, 1, Hd)),             # fc1 w/b
            wfull((nstack, Hd, D)), wfull((nstack, 1, D)),              # fc2 w/b
            branch3((1, 1, D)), branch3((1, 1, D)),                     # final LN g/b
        ],
        out_specs=pl.BlockSpec((1, B, D), lambda r, d: (r, 0, 0)),
        out_shape=jax.ShapeDtypeStruct((2, B, D), jnp.float32),
        scratch_shapes=[pltpu.VMEM((B, Sp, D), jnp.float32)],
        compiler_params=pltpu.CompilerParams(
            dimension_semantics=("parallel", "arbitrary")),
    )(patches, params["embed_w"], params["embed_b"], cls_pos,
      params["ln1_g"], params["ln1_b"], params["qkv_w"], params["qkv_b"],
      params["proj_w"], params["proj_b"], params["ln2_g"], params["ln2_b"],
      params["fc1_w"], params["fc1_b"], params["fc2_w"], params["fc2_b"],
      params["lnf_g"], params["lnf_b"])


# ----------------------------------------------------------------------------
# Forward pass (JAX glue: reshapes/pads + the three tiny classifier heads)
# ----------------------------------------------------------------------------
def exp3_forward(params, x, y, *, patch_size, num_heads, num_classes):
    B, C, L = x.shape
    P = L // patch_size
    S = P + 1
    Sp = _round_up(S, SUBLANE)
    Lp = C * patch_size
    D = params["qkv_w"].shape[1]
    depth = params["qkv_w"].shape[0] // 2

    def to_patches(sig):
        p = sig.reshape(B, C, P, patch_size).transpose(0, 2, 1, 3).reshape(B, P, Lp)
        # row 0 reserved for the cls token, rows > P are sublane padding
        return jnp.pad(p, ((0, 0), (1, Sp - 1 - P), (0, 0)))

    patches = jnp.stack([to_patches(x), to_patches(y)], axis=0)          # (2, B, Sp, Lp)

    pos_pad = jnp.pad(params["pos_embed"][0], ((0, Sp - S), (0, 0)))      # (Sp, D)
    cls_pos = pos_pad[None, :, :] + jnp.pad(params["cls"],
                                            ((0, 0), (0, Sp - 1), (0, 0)))  # (2, Sp, D)

    cls_out = pallas_exp3_encoder(patches, cls_pos, params, B=B, P=P, S=S,
                                  Sp=Sp, depth=depth, num_heads=num_heads)  # (2, B, D)

    x_cls = cls_out[0]                                                    # EEG cls token
    y_cls = cls_out[1]                                                    # EOG cls token

    # classifier heads: microseconds of work -> plain XLA, no extra kernel launch
    pred1 = jnp.dot(x_cls, params["cls1_w"]) + params["cls1_b"]
    pred2 = jnp.dot(y_cls, params["cls2_w"]) + params["cls2_b"]
    pred3 = (jnp.dot(x_cls, params["cls3_w"][:D])
             + jnp.dot(y_cls, params["cls3_w"][D:]) + params["cls3_b"])
    return pred1, pred2, pred3


# ----------------------------------------------------------------------------
# Deterministic synthetic parameters (kernel-ready stacked layout)
# ----------------------------------------------------------------------------
def init_params(key, *, embed_dim, depth, num_heads, mlp_ratio, patch_size,
                in_chans, num_classes, num_patches):
    D = embed_dim
    Hd = int(mlp_ratio * D)
    Lp = in_chans * patch_size
    nstack = 2 * depth                              # branch-major stacking of blocks
    keys = iter(jax.random.split(key, 64))

    def w(shape):
        return 0.02 * jax.random.normal(next(keys), shape, jnp.float32)

    pos = get_1d_sincos_pos_embed(D, num_patches, cls_token=True)
    bf16 = jnp.bfloat16

    return dict(
        pos_embed=jnp.asarray(pos)[None],                               # (1, P+1, D), frozen
        cls=jnp.zeros((2, 1, D), jnp.float32),                          # cls_token1 / cls_token2
        embed_w=jnp.stack([w((Lp, D)) for _ in range(2)]).astype(bf16),  # (2, Lp, D)
        embed_b=jnp.zeros((2, 1, D), jnp.float32),
        ln1_g=jnp.ones((nstack, 1, D), jnp.float32),
        ln1_b=jnp.zeros((nstack, 1, D), jnp.float32),
        qkv_w=jnp.stack([w((D, 3 * D)) for _ in range(nstack)]).astype(bf16),
        qkv_b=jnp.zeros((nstack, 1, 3 * D), jnp.float32),
        proj_w=jnp.stack([w((D, D)) for _ in range(nstack)]).astype(bf16),
        proj_b=jnp.zeros((nstack, 1, D), jnp.float32),
        ln2_g=jnp.ones((nstack, 1, D), jnp.float32),
        ln2_b=jnp.zeros((nstack, 1, D), jnp.float32),
        fc1_w=jnp.stack([w((D, Hd)) for _ in range(nstack)]).astype(bf16),
        fc1_b=jnp.zeros((nstack, 1, Hd), jnp.float32),
        fc2_w=jnp.stack([w((Hd, D)) for _ in range(nstack)]).astype(bf16),
        fc2_b=jnp.zeros((nstack, 1, D), jnp.float32),
        lnf_g=jnp.ones((2, 1, D), jnp.float32),
        lnf_b=jnp.zeros((2, 1, D), jnp.float32),
        cls1_w=w((D, num_classes)), cls1_b=jnp.zeros((num_classes,), jnp.float32),
        cls2_w=w((D, num_classes)), cls2_b=jnp.zeros((num_classes,), jnp.float32),
        cls3_w=w((2 * D, num_classes)), cls3_b=jnp.zeros((num_classes,), jnp.float32),
    )


# ----------------------------------------------------------------------------
if __name__ == "__main__":
    # Small hyperparameters consistent with the module (embed_dim kept at the
    # module default 128 so activations are lane-dense; shorter signal for speed).
    signal_length, patch_size, in_chans = 240, 30, 1
    embed_dim, depth, num_heads, mlp_ratio, num_classes = 128, 2, 4, 4, 5
    batch = 2
    num_patches = signal_length // patch_size     # 8 -> sequence length 9 (padded to 16)

    key = jax.random.PRNGKey(0)
    kx, ky, kp = jax.random.split(key, 3)
    x = jax.random.normal(kx, (batch, in_chans, signal_length), jnp.float32)
    y = jax.random.normal(ky, (batch, in_chans, signal_length), jnp.float32)

    params = init_params(
        kp, embed_dim=embed_dim, depth=depth, num_heads=num_heads,
        mlp_ratio=mlp_ratio, patch_size=patch_size, in_chans=in_chans,
        num_classes=num_classes, num_patches=num_patches)

    fwd = jax.jit(functools.partial(exp3_forward, patch_size=patch_size,
                                    num_heads=num_heads, num_classes=num_classes))
    pred1, pred2, pred3 = fwd(params, x, y)
    jax.block_until_ready((pred1, pred2, pred3))

    assert pred1.shape == (batch, num_classes)
    assert pred2.shape == (batch, num_classes)
    assert pred3.shape == (batch, num_classes)
    assert bool(jnp.all(jnp.isfinite(pred1)) & jnp.all(jnp.isfinite(pred2))
                & jnp.all(jnp.isfinite(pred3)))
    print("KERNEL_OK")
</pallas_src>

<mosaic_0001>
module attributes {stable_mosaic.version = 11 : i64} {
  func.func @kernel(%arg0: i32, %arg1: i32, %arg2: memref<1x2x16x30xf32, #tpu.memory_space<vmem>>, %arg3: memref<1x30x128xbf16, #tpu.memory_space<vmem>>, %arg4: memref<1x1x128xf32, #tpu.memory_space<vmem>>, %arg5: memref<1x16x128xf32, #tpu.memory_space<vmem>>, %arg6: memref<4x1x128xf32, #tpu.memory_space<vmem>>, %arg7: memref<4x1x128xf32, #tpu.memory_space<vmem>>, %arg8: memref<4x128x384xbf16, #tpu.memory_space<vmem>>, %arg9: memref<4x1x384xf32, #tpu.memory_space<vmem>>, %arg10: memref<4x128x128xbf16, #tpu.memory_space<vmem>>, %arg11: memref<4x1x128xf32, #tpu.memory_space<vmem>>, %arg12: memref<4x1x128xf32, #tpu.memory_space<vmem>>, %arg13: memref<4x1x128xf32, #tpu.memory_space<vmem>>, %arg14: memref<4x128x512xbf16, #tpu.memory_space<vmem>>, %arg15: memref<4x1x512xf32, #tpu.memory_space<vmem>>, %arg16: memref<4x512x128xbf16, #tpu.memory_space<vmem>>, %arg17: memref<4x1x128xf32, #tpu.memory_space<vmem>>, %arg18: memref<1x1x128xf32, #tpu.memory_space<vmem>>, %arg19: memref<1x1x128xf32, #tpu.memory_space<vmem>>, %arg20: memref<1x2x128xf32, #tpu.memory_space<vmem>>, %arg21: memref<2x16x128xf32, #tpu.memory_space<vmem>>) attributes {dimension_semantics = [#tpu.dimension_semantics<parallel>, #tpu.dimension_semantics<arbitrary>], iteration_bounds = array<i64: 2, 2>, scalar_prefetch = 0 : i64, scratch_operands = 1 : i64, tpu.core_type = #tpu.core_type<tc>, window_params = [{transform_indices = @transform_0, window_bounds = array<i64: 1, 2, 16, 30>}, {transform_indices = @transform_1, window_bounds = array<i64: 1, 30, 128>}, {transform_indices = @transform_2, window_bounds = array<i64: 1, 1, 128>}, {transform_indices = @transform_3, window_bounds = array<i64: 1, 16, 128>}, {pipeline_mode = #tpu.pipeline_mode<synchronous>, transform_indices = @transform_4, window_bounds = array<i64: 4, 1, 128>}, {pipeline_mode = #tpu.pipeline_mode<synchronous>, transform_indices = @transform_5, window_bounds = array<i64: 4, 1, 128>}, {pipeline_mode = #tpu.pipeline_mode<synchronous>, transform_indices = @transform_6, window_bounds = array<i64: 4, 128, 384>}, {pipeline_mode = #tpu.pipeline_mode<synchronous>, transform_indices = @transform_7, window_bounds = array<i64: 4, 1, 384>}, {pipeline_mode = #tpu.pipeline_mode<synchronous>, transform_indices = @transform_8, window_bounds = array<i64: 4, 128, 128>}, {pipeline_mode = #tpu.pipeline_mode<synchronous>, transform_indices = @transform_9, window_bounds = array<i64: 4, 1, 128>}, {pipeline_mode = #tpu.pipeline_mode<synchronous>, transform_indices = @transform_10, window_bounds = array<i64: 4, 1, 128>}, {pipeline_mode = #tpu.pipeline_mode<synchronous>, transform_indices = @transform_11, window_bounds = array<i64: 4, 1, 128>}, {pipeline_mode = #tpu.pipeline_mode<synchronous>, transform_indices = @transform_12, window_bounds = array<i64: 4, 128, 512>}, {pipeline_mode = #tpu.pipeline_mode<synchronous>, transform_indices = @transform_13, window_bounds = array<i64: 4, 1, 512>}, {pipeline_mode = #tpu.pipeline_mode<synchronous>, transform_indices = @transform_14, window_bounds = array<i64: 4, 512, 128>}, {pipeline_mode = #tpu.pipeline_mode<synchronous>, transform_indices = @transform_15, window_bounds = array<i64: 4, 1, 128>}, {transform_indices = @transform_16, window_bounds = array<i64: 1, 1, 128>}, {transform_indices = @transform_17, window_bounds = array<i64: 1, 1, 128>}, {transform_indices = @transform_18, window_bounds = array<i64: 1, 2, 128>}]} {
    %c2_i32 = arith.constant 2 : i32
    %0 = arith.muli %arg0, %c2_i32 : i32
    %1 = arith.addi %0, %arg1 : i32
    %c0_i32 = arith.constant 0 : i32
    %2 = arith.cmpi eq, %arg1, %c0_i32 : i32
    %3 = arith.extui %2 : i1 to i32
    %c0_i32_0 = arith.constant 0 : i32
    %4 = arith.cmpi ne, %3, %c0_i32_0 : i32
    scf.if %4 {
      %c0_73 = arith.constant 0 : index
      %c0_74 = arith.constant 0 : index
      %c0_75 = arith.constant 0 : index
      %c0_76 = arith.constant 0 : index
      %216 = vector.load %arg2[%c0_73, %c0_74, %c0_75, %c0_76] : memref<1x2x16x30xf32, #tpu.memory_space<vmem>>, vector<1x2x16x30xf32>
      %217 = vector.shape_cast %216 : vector<1x2x16x30xf32> to vector<2x16x30xf32>
      %218 = vector.shape_cast %217 : vector<2x16x30xf32> to vector<32x30xf32>
      %219 = arith.truncf %218 : vector<32x30xf32> to vector<32x30xbf16>
      %c0_77 = arith.constant 0 : index
      %c0_78 = arith.constant 0 : index
      %c0_79 = arith.constant 0 : index
      %220 = vector.load %arg3[%c0_77, %c0_78, %c0_79] : memref<1x30x128xbf16, #tpu.memory_space<vmem>>, vector<1x30x128xbf16>
      %221 = vector.shape_cast %220 : vector<1x30x128xbf16> to vector<30x128xbf16>
      %cst_80 = arith.constant dense<0.000000e+00> : vector<32x128xf32>
      %222 = tpu.matmul %219, %221, %cst_80 {dimension_numbers = #tpu.dot_dimension_numbers<[1], [0], [0], [1], [0, 0, 1, 1], [], []>} : vector<32x30xbf16>, vector<30x128xbf16>, vector<32x128xf32> -> vector<32x128xf32>
      %c0_81 = arith.constant 0 : index
      %c0_82 = arith.constant 0 : index
      %c0_83 = arith.constant 0 : index
      %223 = vector.load %arg4[%c0_81, %c0_82, %c0_83] : memref<1x1x128xf32, #tpu.memory_space<vmem>>, vector<1x1x128xf32>
      %224 = vector.shape_cast %223 : vector<1x1x128xf32> to vector<1x128xf32>
      %225 = vector.broadcast %224 : vector<1x128xf32> to vector<32x128xf32>
      %226 = arith.addf %222, %225 : vector<32x128xf32>
      %227 = vector.shape_cast %226 : vector<32x128xf32> to vector<2x16x128xf32>
      %228 = tpu.iota {dimensions = array<i32: 1>} : vector<1x16x1xi32>
      %c1_i32_84 = arith.constant 1 : i32
      %229 = vector.broadcast %c1_i32_84 : i32 to vector<1x16x1xi32>
      %230 = arith.cmpi sge, %228, %229 : vector<1x16x1xi32>
      %c8_i32 = arith.constant 8 : i32
      %231 = vector.broadcast %c8_i32 : i32 to vector<1x16x1xi32>
      %232 = arith.cmpi sle, %228, %231 : vector<1x16x1xi32>
      %233 = arith.andi %230, %232 : vector<1x16x1xi1>
      %cst_85 = arith.constant 0.000000e+00 : f32
      %234 = vector.shape_cast %233 : vector<1x16x1xi1> to vector<1x16x1xi1>
      %235 = vector.broadcast %234 : vector<1x16x1xi1> to vector<2x16x128xi1>
      %236 = vector.broadcast %cst_85 : f32 to vector<2x16x128xf32>
      %237 = arith.select %235, %227, %236 : vector<2x16x128xi1>, vector<2x16x128xf32>
      %c0_86 = arith.constant 0 : index
      %c0_87 = arith.constant 0 : index
      %c0_88 = arith.constant 0 : index
      %238 = vector.load %arg5[%c0_86, %c0_87, %c0_88] : memref<1x16x128xf32, #tpu.memory_space<vmem>>, vector<1x16x128xf32>
      %239 = vector.shape_cast %238 : vector<1x16x128xf32> to vector<16x128xf32>
      %240 = vector.shape_cast %239 : vector<16x128xf32> to vector<1x16x128xf32>
      %241 = vector.broadcast %240 : vector<1x16x128xf32> to vector<2x16x128xf32>
      %242 = arith.addf %237, %241 : vector<2x16x128xf32>
      %c0_89 = arith.constant 0 : index
      %c0_90 = arith.constant 0 : index
      %c0_91 = arith.constant 0 : index
      %243 = vector.load %arg21[%c0_89, %c0_90, %c0_91] : memref<2x16x128xf32, #tpu.memory_space<vmem>>, vector<2x16x128xf32>
      tpu.vector_store %arg21[%c0_89, %c0_90, %c0_91], %242 {strides = array<i32>} : memref<2x16x128xf32, #tpu.memory_space<vmem>>, vector<2x16x128xf32>,
    } else {
    }
    %c0 = arith.constant 0 : index
    %c0_1 = arith.constant 0 : index
    %c0_2 = arith.constant 0 : index
    %5 = vector.load %arg21[%c0, %c0_1, %c0_2] : memref<2x16x128xf32, #tpu.memory_space<vmem>>, vector<2x16x128xf32>
    %6 = vector.shape_cast %5 : vector<2x16x128xf32> to vector<32x128xf32>
    %7 = arith.index_cast %1 : i32 to index
    %c0_3 = arith.constant 0 : index
    %c0_4 = arith.constant 0 : index
    %8 = vector.load %arg6[%7, %c0_3, %c0_4] : memref<4x1x128xf32, #tpu.memory_space<vmem>>, vector<1x1x128xf32>
    %9 = vector.shape_cast %8 : vector<1x1x128xf32> to vector<1x128xf32>
    %10 = arith.index_cast %1 : i32 to index
    %c0_5 = arith.constant 0 : index
    %c0_6 = arith.constant 0 : index
    %11 = vector.load %arg7[%10, %c0_5, %c0_6] : memref<4x1x128xf32, #tpu.memory_space<vmem>>, vector<1x1x128xf32>
    %12 = vector.shape_cast %11 : vector<1x1x128xf32> to vector<1x128xf32>
    %cst = arith.constant dense<0.000000e+00> : vector<32xf32>
    %13 = vector.multi_reduction <add>, %6, %cst [1] : vector<32x128xf32> to vector<32xf32>
    %14 = vector.shape_cast %13 : vector<32xf32> to vector<32x1xf32>
    %cst_7 = arith.constant 1.280000e+02 : f32
    %15 = vector.broadcast %cst_7 : f32 to vector<32x1xf32>
    %16 = arith.divf %14, %15 : vector<32x1xf32>
    %17 = vector.broadcast %16 : vector<32x1xf32> to vector<32x128xf32>
    %18 = arith.subf %6, %17 : vector<32x128xf32>
    %19 = arith.mulf %18, %18 : vector<32x128xf32>
    %cst_8 = arith.constant dense<0.000000e+00> : vector<32xf32>
    %20 = vector.multi_reduction <add>, %19, %cst_8 [1] : vector<32x128xf32> to vector<32xf32>
    %21 = vector.shape_cast %20 : vector<32xf32> to vector<32x1xf32>
    %cst_9 = arith.constant 1.280000e+02 : f32
    %22 = vector.broadcast %cst_9 : f32 to vector<32x1xf32>
    %23 = arith.divf %21, %22 : vector<32x1xf32>
    %24 = vector.broadcast %16 : vector<32x1xf32> to vector<32x128xf32>
    %25 = arith.subf %6, %24 : vector<32x128xf32>
    %cst_10 = arith.constant 9.99999974E-6 : f32
    %26 = vector.broadcast %cst_10 : f32 to vector<32x1xf32>
    %27 = arith.addf %23, %26 : vector<32x1xf32>
    %28 = math.rsqrt %27 : vector<32x1xf32>
    %29 = vector.broadcast %28 : vector<32x1xf32> to vector<32x128xf32>
    %30 = arith.mulf %25, %29 : vector<32x128xf32>
    %31 = vector.broadcast %9 : vector<1x128xf32> to vector<32x128xf32>
    %32 = arith.mulf %30, %31 : vector<32x128xf32>
    %33 = vector.broadcast %12 : vector<1x128xf32> to vector<32x128xf32>
    %34 = arith.addf %32, %33 : vector<32x128xf32>
    %35 = arith.truncf %34 : vector<32x128xf32> to vector<32x128xbf16>
    %36 = arith.index_cast %1 : i32 to index
    %c0_11 = arith.constant 0 : index
    %c0_12 = arith.constant 0 : index
    %37 = vector.load %arg8[%36, %c0_11, %c0_12] : memref<4x128x384xbf16, #tpu.memory_space<vmem>>, vector<1x128x384xbf16>
    %38 = vector.shape_cast %37 : vector<1x128x384xbf16> to vector<128x384xbf16>
    %cst_13 = arith.constant dense<0.000000e+00> : vector<32x384xf32>
    %39 = tpu.matmul %35, %38, %cst_13 {dimension_numbers = #tpu.dot_dimension_numbers<[1], [0], [0], [1], [0, 0, 1, 1], [], []>} : vector<32x128xbf16>, vector<128x384xbf16>, vector<32x384xf32> -> vector<32x384xf32>
    %40 = arith.index_cast %1 : i32 to index
    %c0_14 = arith.constant 0 : index
    %c0_15 = arith.constant 0 : index
    %41 = vector.load %arg9[%40, %c0_14, %c0_15] : memref<4x1x384xf32, #tpu.memory_space<vmem>>, vector<1x1x384xf32>
    %42 = vector.shape_cast %41 : vector<1x1x384xf32> to vector<1x384xf32>
    %43 = vector.broadcast %42 : vector<1x384xf32> to vector<32x384xf32>
    %44 = arith.addf %39, %43 : vector<32x384xf32>
    %45 = vector.shape_cast %44 : vector<32x384xf32> to vector<2x16x384xf32>
    %46 = tpu.iota {dimensions = array<i32: 2>} : vector<1x16x16xi32>
    %c9_i32 = arith.constant 9 : i32
    %47 = vector.broadcast %c9_i32 : i32 to vector<1x16x16xi32>
    %48 = arith.cmpi slt, %46, %47 : vector<1x16x16xi32>
    %cst_16 = arith.constant 0.000000e+00 : f32
    %cst_17 = arith.constant -1.000000e+30 : f32
    %49 = vector.broadcast %cst_16 : f32 to vector<1x16x16xf32>
    %50 = vector.broadcast %cst_17 : f32 to vector<1x16x16xf32>
    %51 = arith.select %48, %49, %50 : vector<1x16x16xi1>, vector<1x16x16xf32>
    %52 = arith.index_cast %1 : i32 to index
    %c0_18 = arith.constant 0 : index
    %c0_19 = arith.constant 0 : index
    %53 = vector.load %arg10[%52, %c0_18, %c0_19] : memref<4x128x128xbf16, #tpu.memory_space<vmem>>, vector<1x128x128xbf16>
    %54 = vector.shape_cast %53 : vector<1x128x128xbf16> to vector<128x128xbf16>
    %cst_20 = arith.constant 0.000000e+00 : f32
    %55 = vector.broadcast %cst_20 : f32 to vector<32x128xf32>
    %56 = vector.extract_strided_slice %45 {offsets = [0, 0, 0], sizes = [2, 16, 32], strides = [1, 1, 1]} : vector<2x16x384xf32> to vector<2x16x32xf32>
    %57 = vector.extract_strided_slice %45 {offsets = [0, 0, 128], sizes = [2, 16, 32], strides = [1, 1, 1]} : vector<2x16x384xf32> to vector<2x16x32xf32>
    %58 = vector.extract_strided_slice %45 {offsets = [0, 0, 256], sizes = [2, 16, 32], strides = [1, 1, 1]} : vector<2x16x384xf32> to vector<2x16x32xf32>
    %cst_21 = arith.constant dense<0.000000e+00> : vector<2x16x16xf32>
    %59 = tpu.matmul %56, %57, %cst_21 {dimension_numbers = #tpu.dot_dimension_numbers<[2], [2], [1], [1], [0, 0, 0, 1, 1, 1], [0], [0]>} : vector<2x16x32xf32>, vector<2x16x32xf32>, vector<2x16x16xf32> -> vector<2x16x16xf32>
    %cst_22 = arith.constant 0.176776692 : f32
    %60 = vector.broadcast %cst_22 : f32 to vector<2x16x16xf32>
    %61 = arith.mulf %59, %60 : vector<2x16x16xf32>
    %62 = vector.broadcast %51 : vector<1x16x16xf32> to vector<2x16x16xf32>
    %63 = arith.addf %61, %62 : vector<2x16x16xf32>
    %cst_23 = arith.constant dense<0xFF800000> : vector<2x16xf32>
    %64 = vector.multi_reduction <maximumf>, %63, %cst_23 [2] : vector<2x16x16xf32> to vector<2x16xf32>
    %65 = vector.shape_cast %64 : vector<2x16xf32> to vector<2x16x1xf32>
    %66 = vector.broadcast %65 : vector<2x16x1xf32> to vector<2x16x16xf32>
    %67 = arith.subf %63, %66 : vector<2x16x16xf32>
    %68 = math.exp %67 : vector<2x16x16xf32>
    %cst_24 = arith.constant dense<0.000000e+00> : vector<2x16xf32>
    %69 = vector.multi_reduction <add>, %68, %cst_24 [2] : vector<2x16x16xf32> to vector<2x16xf32>
    %70 = vector.shape_cast %69 : vector<2x16xf32> to vector<2x16x1xf32>
    %71 = vector.broadcast %70 : vector<2x16x1xf32> to vector<2x16x16xf32>
    %72 = arith.divf %68, %71 : vector<2x16x16xf32>
    %cst_25 = arith.constant dense<0.000000e+00> : vector<2x16x32xf32>
    %73 = tpu.matmul %72, %58, %cst_25 {dimension_numbers = #tpu.dot_dimension_numbers<[2], [1], [1], [2], [0, 0, 0, 1, 1, 2], [0], [0]>} : vector<2x16x16xf32>, vector<2x16x32xf32>, vector<2x16x32xf32> -> vector<2x16x32xf32>
    %74 = vector.shape_cast %73 : vector<2x16x32xf32> to vector<32x32xf32>
    %75 = arith.truncf %74 : vector<32x32xf32> to vector<32x32xbf16>
    %76 = vector.extract_strided_slice %54 {offsets = [0, 0], sizes = [32, 128], strides = [1, 1]} : vector<128x128xbf16> to vector<32x128xbf16>
    %cst_26 = arith.constant dense<0.000000e+00> : vector<32x128xf32>
    %77 = tpu.matmul %75, %76, %cst_26 {dimension_numbers = #tpu.dot_dimension_numbers<[1], [0], [0], [1], [0, 0, 1, 1], [], []>} : vector<32x32xbf16>, vector<32x128xbf16>, vector<32x128xf32> -> vector<32x128xf32>
    %78 = arith.addf %55, %77 : vector<32x128xf32>
    %79 = vector.extract_strided_slice %45 {offsets = [0, 0, 32], sizes = [2, 16, 32], strides = [1, 1, 1]} : vector<2x16x384xf32> to vector<2x16x32xf32>
    %80 = vector.extract_strided_slice %45 {offsets = [0, 0, 160], sizes = [2, 16, 32], strides = [1, 1, 1]} : vector<2x16x384xf32> to vector<2x16x32xf32>
    %81 = vector.extract_strided_slice %45 {offsets = [0, 0, 288], sizes = [2, 16, 32], strides = [1, 1, 1]} : vector<2x16x384xf32> to vector<2x16x32xf32>
    %cst_27 = arith.constant dense<0.000000e+00> : vector<2x16x16xf32>
    %82 = tpu.matmul %79, %80, %cst_27 {dimension_numbers = #tpu.dot_dimension_numbers<[2], [2], [1], [1], [0, 0, 0, 1, 1, 1], [0], [0]>} : vector<2x16x32xf32>, vector<2x16x32xf32>, vector<2x16x16xf32> -> vector<2x16x16xf32>
    %cst_28 = arith.constant 0.176776692 : f32
    %83 = vector.broadcast %cst_28 : f32 to vector<2x16x16xf32>
    %84 = arith.mulf %82, %83 : vector<2x16x16xf32>
    %85 = vector.broadcast %51 : vector<1x16x16xf32> to vector<2x16x16xf32>
    %86 = arith.addf %84, %85 : vector<2x16x16xf32>
    %cst_29 = arith.constant dense<0xFF800000> : vector<2x16xf32>
    %87 = vector.multi_reduction <maximumf>, %86, %cst_29 [2] : vector<2x16x16xf32> to vector<2x16xf32>
    %88 = vector.shape_cast %87 : vector<2x16xf32> to vector<2x16x1xf32>
    %89 = vector.broadcast %88 : vector<2x16x1xf32> to vector<2x16x16xf32>
    %90 = arith.subf %86, %89 : vector<2x16x16xf32>
    %91 = math.exp %90 : vector<2x16x16xf32>
    %cst_30 = arith.constant dense<0.000000e+00> : vector<2x16xf32>
    %92 = vector.multi_reduction <add>, %91, %cst_30 [2] : vector<2x16x16xf32> to vector<2x16xf32>
    %93 = vector.shape_cast %92 : vector<2x16xf32> to vector<2x16x1xf32>
    %94 = vector.broadcast %93 : vector<2x16x1xf32> to vector<2x16x16xf32>
    %95 = arith.divf %91, %94 : vector<2x16x16xf32>
    %cst_31 = arith.constant dense<0.000000e+00> : vector<2x16x32xf32>
    %96 = tpu.matmul %95, %81, %cst_31 {dimension_numbers = #tpu.dot_dimension_numbers<[2], [1], [1], [2], [0, 0, 0, 1, 1, 2], [0], [0]>} : vector<2x16x16xf32>, vector<2x16x32xf32>, vector<2x16x32xf32> -> vector<2x16x32xf32>
    %97 = vector.shape_cast %96 : vector<2x16x32xf32> to vector<32x32xf32>
    %98 = arith.truncf %97 : vector<32x32xf32> to vector<32x32xbf16>
    %99 = vector.extract_strided_slice %54 {offsets = [32, 0], sizes = [32, 128], strides = [1, 1]} : vector<128x128xbf16> to vector<32x128xbf16>
    %cst_32 = arith.constant dense<0.000000e+00> : vector<32x128xf32>
    %100 = tpu.matmul %98, %99, %cst_32 {dimension_numbers = #tpu.dot_dimension_numbers<[1], [0], [0], [1], [0, 0, 1, 1], [], []>} : vector<32x32xbf16>, vector<32x128xbf16>, vector<32x128xf32> -> vector<32x128xf32>
    %101 = arith.addf %78, %100 : vector<32x128xf32>
    %102 = vector.extract_strided_slice %45 {offsets = [0, 0, 64], sizes = [2, 16, 32], strides = [1, 1, 1]} : vector<2x16x384xf32> to vector<2x16x32xf32>
    %103 = vector.extract_strided_slice %45 {offsets = [0, 0, 192], sizes = [2, 16, 32], strides = [1, 1, 1]} : vector<2x16x384xf32> to vector<2x16x32xf32>
    %104 = vector.extract_strided_slice %45 {offsets = [0, 0, 320], sizes = [2, 16, 32], strides = [1, 1, 1]} : vector<2x16x384xf32> to vector<2x16x32xf32>
    %cst_33 = arith.constant dense<0.000000e+00> : vector<2x16x16xf32>
    %105 = tpu.matmul %102, %103, %cst_33 {dimension_numbers = #tpu.dot_dimension_numbers<[2], [2], [1], [1], [0, 0, 0, 1, 1, 1], [0], [0]>} : vector<2x16x32xf32>, vector<2x16x32xf32>, vector<2x16x16xf32> -> vector<2x16x16xf32>
    %cst_34 = arith.constant 0.176776692 : f32
    %106 = vector.broadcast %cst_34 : f32 to vector<2x16x16xf32>
    %107 = arith.mulf %105, %106 : vector<2x16x16xf32>
    %108 = vector.broadcast %51 : vector<1x16x16xf32> to vector<2x16x16xf32>
    %109 = arith.addf %107, %108 : vector<2x16x16xf32>
    %cst_35 = arith.constant dense<0xFF800000> : vector<2x16xf32>
    %110 = vector.multi_reduction <maximumf>, %109, %cst_35 [2] : vector<2x16x16xf32> to vector<2x16xf32>
    %111 = vector.shape_cast %110 : vector<2x16xf32> to vector<2x16x1xf32>
    %112 = vector.broadcast %111 : vector<2x16x1xf32> to vector<2x16x16xf32>
    %113 = arith.subf %109, %112 : vector<2x16x16xf32>
    %114 = math.exp %113 : vector<2x16x16xf32>
    %cst_36 = arith.constant dense<0.000000e+00> : vector<2x16xf32>
    %115 = vector.multi_reduction <add>, %114, %cst_36 [2] : vector<2x16x16xf32> to vector<2x16xf32>
    %116 = vector.shape_cast %115 : vector<2x16xf32> to vector<2x16x1xf32>
    %117 = vector.broadcast %116 : vector<2x16x1xf32> to vector<2x16x16xf32>
    %118 = arith.divf %114, %117 : vector<2x16x16xf32>
    %cst_37 = arith.constant dense<0.000000e+00> : vector<2x16x32xf32>
    %119 = tpu.matmul %118, %104, %cst_37 {dimension_numbers = #tpu.dot_dimension_numbers<[2], [1], [1], [2], [0, 0, 0, 1, 1, 2], [0], [0]>} : vector<2x16x16xf32>, vector<2x16x32xf32>, vector<2x16x32xf32> -> vector<2x16x32xf32>
    %120 = vector.shape_cast %119 : vector<2x16x32xf32> to vector<32x32xf32>
    %121 = arith.truncf %120 : vector<32x32xf32> to vector<32x32xbf16>
    %122 = vector.extract_strided_slice %54 {offsets = [64, 0], sizes = [32, 128], strides = [1, 1]} : vector<128x128xbf16> to vector<32x128xbf16>
    %cst_38 = arith.constant dense<0.000000e+00> : vector<32x128xf32>
    %123 = tpu.matmul %121, %122, %cst_38 {dimension_numbers = #tpu.dot_dimension_numbers<[1], [0], [0], [1], [0, 0, 1, 1], [], []>} : vector<32x32xbf16>, vector<32x128xbf16>, vector<32x128xf32> -> vector<32x128xf32>
    %124 = arith.addf %101, %123 : vector<32x128xf32>
    %125 = vector.extract_strided_slice %45 {offsets = [0, 0, 96], sizes = [2, 16, 32], strides = [1, 1, 1]} : vector<2x16x384xf32> to vector<2x16x32xf32>
    %126 = vector.extract_strided_slice %45 {offsets = [0, 0, 224], sizes = [2, 16, 32], strides = [1, 1, 1]} : vector<2x16x384xf32> to vector<2x16x32xf32>
    %127 = vector.extract_strided_slice %45 {offsets = [0, 0, 352], sizes = [2, 16, 32], strides = [1, 1, 1]} : vector<2x16x384xf32> to vector<2x16x32xf32>
    %cst_39 = arith.constant dense<0.000000e+00> : vector<2x16x16xf32>
    %128 = tpu.matmul %125, %126, %cst_39 {dimension_numbers = #tpu.dot_dimension_numbers<[2], [2], [1], [1], [0, 0, 0, 1, 1, 1], [0], [0]>} : vector<2x16x32xf32>, vector<2x16x32xf32>, vector<2x16x16xf32> -> vector<2x16x16xf32>
    %cst_40 = arith.constant 0.176776692 : f32
    %129 = vector.broadcast %cst_40 : f32 to vector<2x16x16xf32>
    %130 = arith.mulf %128, %129 : vector<2x16x16xf32>
    %131 = vector.broadcast %51 : vector<1x16x16xf32> to vector<2x16x16xf32>
    %132 = arith.addf %130, %131 : vector<2x16x16xf32>
    %cst_41 = arith.constant dense<0xFF800000> : vector<2x16xf32>
    %133 = vector.multi_reduction <maximumf>, %132, %cst_41 [2] : vector<2x16x16xf32> to vector<2x16xf32>
    %134 = vector.shape_cast %133 : vector<2x16xf32> to vector<2x16x1xf32>
    %135 = vector.broadcast %134 : vector<2x16x1xf32> to vector<2x16x16xf32>
    %136 = arith.subf %132, %135 : vector<2x16x16xf32>
    %137 = math.exp %136 : vector<2x16x16xf32>
    %cst_42 = arith.constant dense<0.000000e+00> : vector<2x16xf32>
    %138 = vector.multi_reduction <add>, %137, %cst_42 [2] : vector<2x16x16xf32> to vector<2x16xf32>
    %139 = vector.shape_cast %138 : vector<2x16xf32> to vector<2x16x1xf32>
    %140 = vector.broadcast %139 : vector<2x16x1xf32> to vector<2x16x16xf32>
    %141 = arith.divf %137, %140 : vector<2x16x16xf32>
    %cst_43 = arith.constant dense<0.000000e+00> : vector<2x16x32xf32>
    %142 = tpu.matmul %141, %127, %cst_43 {dimension_numbers = #tpu.dot_dimension_numbers<[2], [1], [1], [2], [0, 0, 0, 1, 1, 2], [0], [0]>} : vector<2x16x16xf32>, vector<2x16x32xf32>, vector<2x16x32xf32> -> vector<2x16x32xf32>
    %143 = vector.shape_cast %142 : vector<2x16x32xf32> to vector<32x32xf32>
    %144 = arith.truncf %143 : vector<32x32xf32> to vector<32x32xbf16>
    %145 = vector.extract_strided_slice %54 {offsets = [96, 0], sizes = [32, 128], strides = [1, 1]} : vector<128x128xbf16> to vector<32x128xbf16>
    %cst_44 = arith.constant dense<0.000000e+00> : vector<32x128xf32>
    %146 = tpu.matmul %144, %145, %cst_44 {dimension_numbers = #tpu.dot_dimension_numbers<[1], [0], [0], [1], [0, 0, 1, 1], [], []>} : vector<32x32xbf16>, vector<32x128xbf16>, vector<32x128xf32> -> vector<32x128xf32>
    %147 = arith.addf %124, %146 : vector<32x128xf32>
    %148 = arith.addf %6, %147 : vector<32x128xf32>
    %149 = arith.index_cast %1 : i32 to index
    %c0_45 = arith.constant 0 : index
    %c0_46 = arith.constant 0 : index
    %150 = vector.load %arg11[%149, %c0_45, %c0_46] : memref<4x1x128xf32, #tpu.memory_space<vmem>>, vector<1x1x128xf32>
    %151 = vector.shape_cast %150 : vector<1x1x128xf32> to vector<1x128xf32>
    %152 = vector.broadcast %151 : vector<1x128xf32> to vector<32x128xf32>
    %153 = arith.addf %148, %152 : vector<32x128xf32>
    %154 = arith.index_cast %1 : i32 to index
    %c0_47 = arith.constant 0 : index
    %c0_48 = arith.constant 0 : index
    %155 = vector.load %arg12[%154, %c0_47, %c0_48] : memref<4x1x128xf32, #tpu.memory_space<vmem>>, vector<1x1x128xf32>
    %156 = vector.shape_cast %155 : vector<1x1x128xf32> to vector<1x128xf32>
    %157 = arith.index_cast %1 : i32 to index
    %c0_49 = arith.constant 0 : index
    %c0_50 = arith.constant 0 : index
    %158 = vector.load %arg13[%157, %c0_49, %c0_50] : memref<4x1x128xf32, #tpu.memory_space<vmem>>, vector<1x1x128xf32>
    %159 = vector.shape_cast %158 : vector<1x1x128xf32> to vector<1x128xf32>
    %cst_51 = arith.constant dense<0.000000e+00> : vector<32xf32>
    %160 = vector.multi_reduction <add>, %153, %cst_51 [1] : vector<32x128xf32> to vector<32xf32>
    %161 = vector.shape_cast %160 : vector<32xf32> to vector<32x1xf32>
    %cst_52 = arith.constant 1.280000e+02 : f32
    %162 = vector.broadcast %cst_52 : f32 to vector<32x1xf32>
    %163 = arith.divf %161, %162 : vector<32x1xf32>
    %164 = vector.broadcast %163 : vector<32x1xf32> to vector<32x128xf32>
    %165 = arith.subf %153, %164 : vector<32x128xf32>
    %166 = arith.mulf %165, %165 : vector<32x128xf32>
    %cst_53 = arith.constant dense<0.000000e+00> : vector<32xf32>
    %167 = vector.multi_reduction <add>, %166, %cst_53 [1] : vector<32x128xf32> to vector<32xf32>
    %168 = vector.shape_cast %167 : vector<32xf32> to vector<32x1xf32>
    %cst_54 = arith.constant 1.280000e+02 : f32
    %169 = vector.broadcast %cst_54 : f32 to vector<32x1xf32>
    %170 = arith.divf %168, %169 : vector<32x1xf32>
    %171 = vector.broadcast %163 : vector<32x1xf32> to vector<32x128xf32>
    %172 = arith.subf %153, %171 : vector<32x128xf32>
    %cst_55 = arith.constant 9.99999974E-6 : f32
    %173 = vector.broadcast %cst_55 : f32 to vector<32x1xf32>
    %174 = arith.addf %170, %173 : vector<32x1xf32>
    %175 = math.rsqrt %174 : vector<32x1xf32>
    %176 = vector.broadcast %175 : vector<32x1xf32> to vector<32x128xf32>
    %177 = arith.mulf %172, %176 : vector<32x128xf32>
    %178 = vector.broadcast %156 : vector<1x128xf32> to vector<32x128xf32>
    %179 = arith.mulf %177, %178 : vector<32x128xf32>
    %180 = vector.broadcast %159 : vector<1x128xf32> to vector<32x128xf32>
    %181 = arith.addf %179, %180 : vector<32x128xf32>
    %182 = arith.truncf %181 : vector<32x128xf32> to vector<32x128xbf16>
    %183 = arith.index_cast %1 : i32 to index
    %c0_56 = arith.constant 0 : index
    %c0_57 = arith.constant 0 : index
    %184 = vector.load %arg14[%183, %c0_56, %c0_57] : memref<4x128x512xbf16, #tpu.memory_space<vmem>>, vector<1x128x512xbf16>
    %185 = vector.shape_cast %184 : vector<1x128x512xbf16> to vector<128x512xbf16>
    %cst_58 = arith.constant dense<0.000000e+00> : vector<32x512xf32>
    %186 = tpu.matmul %182, %185, %cst_58 {dimension_numbers = #tpu.dot_dimension_numbers<[1], [0], [0], [1], [0, 0, 1, 1], [], []>} : vector<32x128xbf16>, vector<128x512xbf16>, vector<32x512xf32> -> vector<32x512xf32>
    %187 = arith.index_cast %1 : i32 to index
    %c0_59 = arith.constant 0 : index
    %c0_60 = arith.constant 0 : index
    %188 = vector.load %arg15[%187, %c0_59, %c0_60] : memref<4x1x512xf32, #tpu.memory_space<vmem>>, vector<1x1x512xf32>
    %189 = vector.shape_cast %188 : vector<1x1x512xf32> to vector<1x512xf32>
    %190 = vector.broadcast %189 : vector<1x512xf32> to vector<32x512xf32>
    %191 = arith.addf %186, %190 : vector<32x512xf32>
    %cst_61 = arith.constant 5.000000e-01 : f32
    %192 = vector.broadcast %cst_61 : f32 to vector<32x512xf32>
    %193 = arith.mulf %192, %191 : vector<32x512xf32>
    %cst_62 = arith.constant 0.707106769 : f32
    %194 = vector.broadcast %cst_62 : f32 to vector<32x512xf32>
    %195 = arith.mulf %191, %194 : vector<32x512xf32>
    %196 = math.erf %195 : vector<32x512xf32>
    %cst_63 = arith.constant 1.000000e+00 : f32
    %197 = vector.broadcast %cst_63 : f32 to vector<32x512xf32>
    %198 = arith.addf %197, %196 : vector<32x512xf32>
    %199 = arith.mulf %193, %198 : vector<32x512xf32>
    %200 = arith.truncf %199 : vector<32x512xf32> to vector<32x512xbf16>
    %201 = arith.index_cast %1 : i32 to index
    %c0_64 = arith.constant 0 : index
    %c0_65 = arith.constant 0 : index
    %202 = vector.load %arg16[%201, %c0_64, %c0_65] : memref<4x512x128xbf16, #tpu.memory_space<vmem>>, vector<1x512x128xbf16>
    %203 = vector.shape_cast %202 : vector<1x512x128xbf16> to vector<512x128xbf16>
    %cst_66 = arith.constant dense<0.000000e+00> : vector<32x128xf32>
    %204 = tpu.matmul %200, %203, %cst_66 {dimension_numbers = #tpu.dot_dimension_numbers<[1], [0], [0], [1], [0, 0, 1, 1], [], []>} : vector<32x512xbf16>, vector<512x128xbf16>, vector<32x128xf32> -> vector<32x128xf32>
    %205 = arith.addf %153, %204 : vector<32x128xf32>
    %206 = arith.index_cast %1 : i32 to index
    %c0_67 = arith.constant 0 : index
    %c0_68 = arith.constant 0 : index
    %207 = vector.load %arg17[%206, %c0_67, %c0_68] : memref<4x1x128xf32, #tpu.memory_space<vmem>>, vector<1x1x128xf32>
    %208 = vector.shape_cast %207 : vector<1x1x128xf32> to vector<1x128xf32>
    %209 = vector.broadcast %208 : vector<1x128xf32> to vector<32x128xf32>
    %210 = arith.addf %205, %209 : vector<32x128xf32>
    %211 = vector.shape_cast %210 : vector<32x128xf32> to vector<2x16x128xf32>
    %c0_69 = arith.constant 0 : index
    %c0_70 = arith.constant 0 : index
    %c0_71 = arith.constant 0 : index
    %212 = vector.load %arg21[%c0_69, %c0_70, %c0_71] : memref<2x16x128xf32, #tpu.memory_space<vmem>>, vector<2x16x128xf32>
    tpu.vector_store %arg21[%c0_69, %c0_70, %c0_71], %211 {strides = array<i32>} : memref<2x16x128xf32, #tpu.memory_space<vmem>>, vector<2x16x128xf32>,
    %c1_i32 = arith.constant 1 : i32
    %213 = arith.cmpi eq, %arg1, %c1_i32 : i32
    %214 = arith.extui %213 : i1 to i32
    %c0_i32_72 = arith.constant 0 : i32
    %215 = arith.cmpi ne, %214, %c0_i32_72 : i32
    scf.if %215 {
      %216 = vector.shape_cast %210 : vector<32x128xf32> to vector<2x16x128xf32>
      %217 = vector.extract_strided_slice %216 {offsets = [0, 0, 0], sizes = [2, 1, 128], strides = [1, 1, 1]} : vector<2x16x128xf32> to vector<2x1x128xf32>
      %218 = vector.shape_cast %217 : vector<2x1x128xf32> to vector<2x128xf32>
      %c0_73 = arith.constant 0 : index
      %c0_74 = arith.constant 0 : index
      %c0_75 = arith.constant 0 : index
      %219 = vector.load %arg18[%c0_73, %c0_74, %c0_75] : memref<1x1x128xf32, #tpu.memory_space<vmem>>, vector<1x1x128xf32>
      %220 = vector.shape_cast %219 : vector<1x1x128xf32> to vector<1x128xf32>
      %c0_76 = arith.constant 0 : index
      %c0_77 = arith.constant 0 : index
      %c0_78 = arith.constant 0 : index
      %221 = vector.load %arg19[%c0_76, %c0_77, %c0_78] : memref<1x1x128xf32, #tpu.memory_space<vmem>>, vector<1x1x128xf32>
      %222 = vector.shape_cast %221 : vector<1x1x128xf32> to vector<1x128xf32>
      %cst_79 = arith.constant dense<0.000000e+00> : vector<2xf32>
      %223 = vector.multi_reduction <add>, %218, %cst_79 [1] : vector<2x128xf32> to vector<2xf32>
      %224 = vector.shape_cast %223 : vector<2xf32> to vector<2x1xf32>
      %cst_80 = arith.constant 1.280000e+02 : f32
      %225 = vector.broadcast %cst_80 : f32 to vector<2x1xf32>
      %226 = arith.divf %224, %225 : vector<2x1xf32>
      %227 = vector.broadcast %226 : vector<2x1xf32> to vector<2x128xf32>
      %228 = arith.subf %218, %227 : vector<2x128xf32>
      %229 = arith.mulf %228, %228 : vector<2x128xf32>
      %cst_81 = arith.constant dense<0.000000e+00> : vector<2xf32>
      %230 = vector.multi_reduction <add>, %229, %cst_81 [1] : vector<2x128xf32> to vector<2xf32>
      %231 = vector.shape_cast %230 : vector<2xf32> to vector<2x1xf32>
      %cst_82 = arith.constant 1.280000e+02 : f32
      %232 = vector.broadcast %cst_82 : f32 to vector<2x1xf32>
      %233 = arith.divf %231, %232 : vector<2x1xf32>
      %234 = vector.broadcast %226 : vector<2x1xf32> to vector<2x128xf32>
      %235 = arith.subf %218, %234 : vector<2x128xf32>
      %cst_83 = arith.constant 9.99999974E-6 : f32
      %236 = vector.broadcast %cst_83 : f32 to vector<2x1xf32>
      %237 = arith.addf %233, %236 : vector<2x1xf32>
      %238 = math.rsqrt %237 : vector<2x1xf32>
      %239 = vector.broadcast %238 : vector<2x1xf32> to vector<2x128xf32>
      %240 = arith.mulf %235, %239 : vector<2x128xf32>
      %241 = vector.broadcast %220 : vector<1x128xf32> to vector<2x128xf32>
      %242 = arith.mulf %240, %241 : vector<2x128xf32>
      %243 = vector.broadcast %222 : vector<1x128xf32> to vector<2x128xf32>
      %244 = arith.addf %242, %243 : vector<2x128xf32>
      %c0_84 = arith.constant 0 : index
      %c0_85 = arith.constant 0 : index
      %c0_86 = arith.constant 0 : index
      %245 = vector.load %arg20[%c0_84, %c0_85, %c0_86] : memref<1x2x128xf32, #tpu.memory_space<vmem>>, vector<1x2x128xf32>
      %246 = vector.shape_cast %245 : vector<1x2x128xf32> to vector<2x128xf32>
      %247 = vector.shape_cast %244 : vector<2x128xf32> to vector<1x2x128xf32>
      tpu.vector_store %arg20[%c0_84, %c0_85, %c0_86], %247 {strides = array<i32>} : memref<1x2x128xf32, #tpu.memory_space<vmem>>, vector<1x2x128xf32>,
    } else {
    }
    return
  }
  func.func @transform_0(%arg0: i32, %arg1: i32) -> (i32, i32, i32, i32) {
    %c0_i32 = arith.constant 0 : i32
    %c0_i32_0 = arith.constant 0 : i32
    %c0_i32_1 = arith.constant 0 : i32
    %c0_i32_2 = arith.constant 0 : i32
    return %arg0, %c0_i32, %c0_i32_0, %c0_i32_1 : i32, i32, i32, i32
  }
  func.func @transform_1(%arg0: i32, %arg1: i32) -> (i32, i32, i32) {
    %c0_i32 = arith.constant 0 : i32
    %c0_i32_0 = arith.constant 0 : i32
    %c0_i32_1 = arith.constant 0 : i32
    return %arg0, %c0_i32, %c0_i32_0 : i32, i32, i32
  }
  func.func @transform_2(%arg0: i32, %arg1: i32) -> (i32, i32, i32) {
    %c0_i32 = arith.constant 0 : i32
    %c0_i32_0 = arith.constant 0 : i32
    %c0_i32_1 = arith.constant 0 : i32
    return %arg0, %c0_i32, %c0_i32_0 : i32, i32, i32
  }
  func.func @transform_3(%arg0: i32, %arg1: i32) -> (i32, i32, i32) {
    %c0_i32 = arith.constant 0 : i32
    %c0_i32_0 = arith.constant 0 : i32
    %c0_i32_1 = arith.constant 0 : i32
    return %arg0, %c0_i32, %c0_i32_0 : i32, i32, i32
  }
  func.func @transform_4(%arg0: i32, %arg1: i32) -> (i32, i32, i32) {
    %c0_i32 = arith.constant 0 : i32
    %c0_i32_0 = arith.constant 0 : i32
    %c0_i32_1 = arith.constant 0 : i32
    %c0_i32_2 = arith.constant 0 : i32
    return %c0_i32, %c0_i32_0, %c0_i32_1 : i32, i32, i32
  }
  func.func @transform_5(%arg0: i32, %arg1: i32) -> (i32, i32, i32) {
    %c0_i32 = arith.constant 0 : i32
    %c0_i32_0 = arith.constant 0 : i32
    %c0_i32_1 = arith.constant 0 : i32
    %c0_i32_2 = arith.constant 0 : i32
    return %c0_i32, %c0_i32_0, %c0_i32_1 : i32, i32, i32
  }
  func.func @transform_6(%arg0: i32, %arg1: i32) -> (i32, i32, i32) {
    %c0_i32 = arith.constant 0 : i32
    %c0_i32_0 = arith.constant 0 : i32
    %c0_i32_1 = arith.constant 0 : i32
    %c0_i32_2 = arith.constant 0 : i32
    return %c0_i32, %c0_i32_0, %c0_i32_1 : i32, i32, i32
  }
  func.func @transform_7(%arg0: i32, %arg1: i32) -> (i32, i32, i32) {
    %c0_i32 = arith.constant 0 : i32
    %c0_i32_0 = arith.constant 0 : i32
    %c0_i32_1 = arith.constant 0 : i32
    %c0_i32_2 = arith.constant 0 : i32
    return %c0_i32, %c0_i32_0, %c0_i32_1 : i32, i32, i32
  }
  func.func @transform_8(%arg0: i32, %arg1: i32) -> (i32, i32, i32) {
    %c0_i32 = arith.constant 0 : i32
    %c0_i32_0 = arith.constant 0 : i32
    %c0_i32_1 = arith.constant 0 : i32
    %c0_i32_2 = arith.constant 0 : i32
    return %c0_i32, %c0_i32_0, %c0_i32_1 : i32, i32, i32
  }
  func.func @transform_9(%arg0: i32, %arg1: i32) -> (i32, i32, i32) {
    %c0_i32 = arith.constant 0 : i32
    %c0_i32_0 = arith.constant 0 : i32
    %c0_i32_1 = arith.constant 0 : i32
    %c0_i32_2 = arith.constant 0 : i32
    return %c0_i32, %c0_i32_0, %c0_i32_1 : i32, i32, i32
  }
  func.func @transform_10(%arg0: i32, %arg1: i32) -> (i32, i32, i32) {
    %c0_i32 = arith.constant 0 : i32
    %c0_i32_0 = arith.constant 0 : i32
    %c0_i32_1 = arith.constant 0 : i32
    %c0_i32_2 = arith.constant 0 : i32
    return %c0_i32, %c0_i32_0, %c0_i32_1 : i32, i32, i32
  }
  func.func @transform_11(%arg0: i32, %arg1: i32) -> (i32, i32, i32) {
    %c0_i32 = arith.constant 0 : i32
    %c0_i32_0 = arith.constant 0 : i32
    %c0_i32_1 = arith.constant 0 : i32
    %c0_i32_2 = arith.constant 0 : i32
    return %c0_i32, %c0_i32_0, %c0_i32_1 : i32, i32, i32
  }
  func.func @transform_12(%arg0: i32, %arg1: i32) -> (i32, i32, i32) {
    %c0_i32 = arith.constant 0 : i32
    %c0_i32_0 = arith.constant 0 : i32
    %c0_i32_1 = arith.constant 0 : i32
    %c0_i32_2 = arith.constant 0 : i32
    return %c0_i32, %c0_i32_0, %c0_i32_1 : i32, i32, i32
  }
  func.func @transform_13(%arg0: i32, %arg1: i32) -> (i32, i32, i32) {
    %c0_i32 = arith.constant 0 : i32
    %c0_i32_0 = arith.constant 0 : i32
    %c0_i32_1 = arith.constant 0 : i32
    %c0_i32_2 = arith.constant 0 : i32
    return %c0_i32, %c0_i32_0, %c0_i32_1 : i32, i32, i32
  }
  func.func @transform_14(%arg0: i32, %arg1: i32) -> (i32, i32, i32) {
    %c0_i32 = arith.constant 0 : i32
    %c0_i32_0 = arith.constant 0 : i32
    %c0_i32_1 = arith.constant 0 : i32
    %c0_i32_2 = arith.constant 0 : i32
    return %c0_i32, %c0_i32_0, %c0_i32_1 : i32, i32, i32
  }
  func.func @transform_15(%arg0: i32, %arg1: i32) -> (i32, i32, i32) {
    %c0_i32 = arith.constant 0 : i32
    %c0_i32_0 = arith.constant 0 : i32
    %c0_i32_1 = arith.constant 0 : i32
    %c0_i32_2 = arith.constant 0 : i32
    return %c0_i32, %c0_i32_0, %c0_i32_1 : i32, i32, i32
  }
  func.func @transform_16(%arg0: i32, %arg1: i32) -> (i32, i32, i32) {
    %c0_i32 = arith.constant 0 : i32
    %c0_i32_0 = arith.constant 0 : i32
    %c0_i32_1 = arith.constant 0 : i32
    return %arg0, %c0_i32, %c0_i32_0 : i32, i32, i32
  }
  func.func @transform_17(%arg0: i32, %arg1: i32) -> (i32, i32, i32) {
    %c0_i32 = arith.constant 0 : i32
    %c0_i32_0 = arith.constant 0 : i32
    %c0_i32_1 = arith.constant 0 : i32
    return %arg0, %c0_i32, %c0_i32_0 : i32, i32, i32
  }
  func.func @transform_18(%arg0: i32, %arg1: i32) -> (i32, i32, i32) {
    %c0_i32 = arith.constant 0 : i32
    %c0_i32_0 = arith.constant 0 : i32
    %c0_i32_1 = arith.constant 0 : i32
    return %arg0, %c0_i32, %c0_i32_0 : i32, i32, i32
  }
}

</mosaic_0001>

<bundles_post_ra>
// kernel: exp3_forward.1
= control target key start
LH: loop header
LB: loop body
LE: loop exit
PB: predicated region body
PF: predicated region fallthrough
CT: control target
= control target key end

     0   :  { %s6160_s0 = inlined_call_operand.vmem [shape: f32[2,2,16,30], index: 0, kind: input, shape index: {}]   ;;  %s6161_s1 = inlined_call_operand.vmem [shape: bf16[2,30,128], index: 1, kind: input, shape index: {}]   ;;  %s6162_s2 = inlined_call_operand.vmem [shape: f32[2,1,128], index: 2, kind: input, shape index: {}]   ;;  %s6163_s3 = inlined_call_operand.vmem [shape: f32[2,16,128], index: 3, kind: input, shape index: {}]   ;;  %s6164_s4 = inlined_call_operand.vmem [shape: f32[4,1,128], index: 4, kind: input, shape index: {}]   ;;  %s6165_s5 = inlined_call_operand.vmem [shape: f32[4,1,128], index: 5, kind: input, shape index: {}]   ;;  %s6166_s6 = inlined_call_operand.hbm [shape: bf16[4,128,384], index: 6, kind: input, shape index: {}]   ;;  %s6167_s7 = inlined_call_operand.vmem [shape: f32[4,1,384], index: 7, kind: input, shape index: {}]   ;;  %s6168_s8 = inlined_call_operand.vmem [shape: bf16[4,128,128], index: 8, kind: input, shape index: {}]   ;;  %s6169_s9 = inlined_call_operand.vmem [shape: f32[4,1,128], index: 9, kind: input, shape index: {}]   ;;  %s6170_s10 = inlined_call_operand.vmem [shape: f32[4,1,128], index: 10, kind: input, shape index: {}]   ;;  %s6171_s11 = inlined_call_operand.vmem [shape: f32[4,1,128], index: 11, kind: input, shape index: {}]   ;;  %s6172_s12 = inlined_call_operand.hbm [shape: bf16[4,128,512], index: 12, kind: input, shape index: {}]   ;;  %s6173_s13 = inlined_call_operand.vmem [shape: f32[4,1,512], index: 13, kind: input, shape index: {}]   ;;  %s6174_s14 = inlined_call_operand.hbm [shape: bf16[4,512,128], index: 14, kind: input, shape index: {}]   ;;  %s6175_s15 = inlined_call_operand.vmem [shape: f32[4,1,128], index: 15, kind: input, shape index: {}]   ;;  %s6176_s16 = inlined_call_operand.vmem [shape: f32[2,1,128], index: 16, kind: input, shape index: {}]   ;;  %s6177_s17 = inlined_call_operand.vmem [shape: f32[2,1,128], index: 17, kind: input, shape index: {}]   ;;  %s6178_s18 = inlined_call_operand.vmem [shape: f32[2,2,128], index: 18, kind: output, shape index: {}]  }
   0x1   :  { %6184 = sst [smem:[#allocation14_spill]] %s6160_s0 }
   0x2   :  { %6185 = sst [smem:[#allocation15_spill]] %s6161_s1 }
   0x3   :  { %6186 = sst [smem:[#allocation16_spill]] %s6162_s2 }
   0x4   :  { %6187 = sst [smem:[#allocation17_spill]] %s6166_s6 }
   0x5   :  { %6188 = sst [smem:[#allocation18_spill]] %s6167_s7 }
   0x6   :  { %6189 = sst [smem:[#allocation19_spill]] %s6168_s8 }
   0x7   :  { %6190 = sst [smem:[#allocation20_spill]] %s6169_s9 }
   0x8   :  { %6191 = sst [smem:[#allocation21_spill]] %s6170_s10 }
   0x9   :  { %6192 = sst [smem:[#allocation22_spill]] %s6171_s11 }
   0xa   :  { %6193 = sst [smem:[#allocation23_spill]] %s6172_s12 }
   0xb   :  { %6194 = sst [smem:[#allocation24_spill]] %s6173_s13 }
   0xc   :  { %6195 = sst [smem:[#allocation25_spill]] %s6174_s14 }
   0xd   :  { %6196 = sst [smem:[#allocation26_spill]] %s6175_s15 }
   0xe   :  { %23 = vsyncpa [#allocation4], 0 }
   0xf   :  { %24 = vsyncpa [#allocation6], 0  ;;  %s5486_s27 = smov 0   ;;  %s5488_s28 = smov 0  }
  0x10   :  { %s5490_s29 = smov 0   ;;  %s5492_s30 = smov 0  }
  0x11   :  { %s5494_s0 = smov 0  }
  0x12 LB: > { %6197 = sst [smem:[#allocation10_spill]] %s5371_s30  ;;  %s5377_s19 = smov [#allocation5]   ;;  %s5375_s0 = sphi %s5494_s0, %s30_s0   ;;  %s5371_s30 = sphi %s5492_s30, %s6226_s30   ;;  %s5367_s29 = sphi %s5490_s29, %s6228_s29   ;;  %s5363_s28 = sphi %s5488_s28, %s6224_s28   ;;  %s5359_s27 = sphi %s5486_s27, %s6227_s27  }
  0x13   : > { %6198 = sst [smem:[#allocation11_spill]] %s5375_s0  ;;  %s527_s1 = sshll.u32 %s5377_s19, 4  ;;  %s528_s1 = int_to_ptr.vmem [resolvable:$true] %s527_s1 }
  0x14   : > { %s4246_s20 = sadd.s32 4294967295, %s5375_s0   ;;  %p4248_p0 = scmp.ge.s32.totalorder %s5375_s0, 1 }
  0x15   : > { %p481_p1 = scmp.lt.s32.totalorder %s5375_s0, 5  ;;  %p5514_p2 = scmp.eq.s32.totalorder %s4246_s20, 0 }
  0x16   : > { %s6202_s12 = sld [smem:[#allocation23_spill]] }
  0x17   : > { %s6199_s21 = scalar_select %p5514_p2, 1, 0 }
  0x18   : > { %p5518_p3 = pnand %p4248_p0, %p481_p1 }
  0x1a   : > { %s6200_s22 = scalar_select %p5518_p3, 1, 0 }
  0x1b   : > { %p4875_p4 = pneg %p5518_p3 }
  0x1c   : > { %s5245_s25 = scalar_lea.hbm %s6202_s12, 16384 }
  0x1d   : > { %p5526_p5 = pnand %p5514_p2, %p4875_p4  ;;  %p5246_p6 = scmp.ne.s32.totalorder %s6202_s12, %s5245_s25 }
  0x1e   : > { %p5252_p10 = scmp.lt.u32.totalorder %s5245_s25, %s6202_s12 }
  0x1f   : > { %p5538_p7 = pneg %p5526_p5 }
  0x21   : > { %p5248_p8 = pnand %p5538_p7, %p5246_p6 }
  0x23   : > { %p5249_p9 = pneg %p5248_p8 }
  0x25   : > { %p5254_p11 = pnand %p5252_p10, %p5249_p9 }
  0x27   : > { %5257 = shalt.err (!%p5254_p11)
}
  0x28   : > { %s5258_s23 = scalar_lea.vmem %s528_s1, 16384  ;;  %p5266_p1 = scmp.lt.s32.totalorder %s528_s1, %s528_s1 }
  0x29   : > { %p5259_p12 = scmp.ne.s32.totalorder %s528_s1, %s5258_s23  ;;  %p5267_p4 = scmp.lt.s32.totalorder %s5258_s23, %s5258_s23 }
  0x2b   : > { %p5261_p13 = pnand %p5259_p12, %p5538_p7  ;;  %p5268_p2 = por %p5267_p4, %p5266_p1 }
  0x2d   : > { %p5262_p0 = pneg %p5261_p13 }
  0x2f   : > { %p5269_p3 = pnand %p5268_p2, %p5262_p0 }
  0x31   : > { %5272 = shalt.err (!%p5269_p3)
}
  0x32   : > { %s5378_s24 = smov 256   ;;  %s5379_s15 = smov 16  }
  0x33   : > { %4881 = dma.hbm_to_vmem [thread:$0]  (!%p5526_p5), %s6202_s12, 16384, %s528_s1, [#allocation6], %s5378_s24, %s5378_s24, %s5379_s15  }
  0x34   : > { %s39_s26 = sadd.s32 1, %s5367_s29  ;;  %s42_s19 = sadd.s32 1, %s5371_s30 }
  0x35   : > { %p40_p6 = scmp.ge.s32.totalorder %s39_s26, 2  ;;  %s5380_s13 = smov [#allocation3]  }
  0x36   : > { %s499_s23 = sshll.u32 %s5380_s13, 4  ;;  %s6205_s6 = sld [smem:[#allocation17_spill]]  ;;  %s500_s23 = int_to_ptr.vmem [resolvable:$true] %s499_s23 }
  0x37   : > { %s6230_s26 = smov (%p40_p6, %s39_s26), 0  ;;  %s6232_s19 = smov (!%p40_p6, %s42_s19), %s5371_s30 }
  0x38   : > { %6204 = sst [smem:[#allocation12_spill]] %s6230_s26 }
  0x3c   : > { %s5273_s9 = scalar_lea.hbm %s6205_s6, 12288 }
  0x3d   : > { %p5274_p3 = scmp.ne.s32.totalorder %s6205_s6, %s5273_s9  ;;  %p5280_p10 = scmp.lt.u32.totalorder %s5273_s9, %s6205_s6 }
  0x3f   : > { %p5276_p8 = pnand %p5274_p3, %p5538_p7 }
  0x41   : > { %p5277_p9 = pneg %p5276_p8 }
  0x43   : > { %p5282_p11 = pnand %p5280_p10, %p5277_p9 }
  0x45   : > { %5285 = shalt.err (!%p5282_p11)
}
  0x46   : > { %s5286_s13 = scalar_lea.vmem %s500_s23, 12288  ;;  %p5294_p1 = scmp.lt.s32.totalorder %s500_s23, %s500_s23 }
  0x47   : > { %p5287_p12 = scmp.ne.s32.totalorder %s500_s23, %s5286_s13  ;;  %p5295_p4 = scmp.lt.s32.totalorder %s5286_s13, %s5286_s13 }
  0x49   : > { %p5289_p13 = pnand %p5287_p12, %p5538_p7  ;;  %p5296_p6 = por %p5295_p4, %p5294_p1 }
  0x4b   : > { %p5290_p0 = pneg %p5289_p13 }
  0x4d   : > { %p5297_p2 = pnand %p5296_p6, %p5290_p0 }
  0x4f   : > { %5300 = shalt.err (!%p5297_p2)
}
  0x50   : > { %s5381_s7 = smov 192   ;;  %s5382_s8 = smov 12  }
  0x51   : > { %4878 = dma.hbm_to_vmem [thread:$0]  (!%p5526_p5), %s6205_s6, 12288, %s500_s23, [#allocation4], %s5381_s7, %s5381_s7, %s5382_s8  }
  0x52   : > { %p6206_p3 = scmp.ge.s32.totalorder %s6232_s19, 2  ;;  %s5383_s11 = smov [#allocation7]  }
  0x53   : > { %s543_s15 = sshll.u32 %s5383_s11, 4  ;;  %s6208_s14 = sld [smem:[#allocation25_spill]]  ;;  %s544_s15 = int_to_ptr.vmem [resolvable:$true] %s543_s15 }
  0x54   : > { %s6234_s19 = smov (%p6206_p3, %s6232_s19), 0 }
  0x55   : > { %6207 = sst [smem:[#allocation13_spill]] %s6234_s19 }
  0x59   : > { %s5301_s1 = scalar_lea.hbm %s6208_s14, 16384 }
  0x5a   : > { %p5302_p2 = scmp.ne.s32.totalorder %s6208_s14, %s5301_s1  ;;  %p5308_p10 = scmp.lt.u32.totalorder %s5301_s1, %s6208_s14 }
  0x5c   : > { %p5304_p8 = pnand %p5302_p2, %p5538_p7 }
  0x5e   : > { %p5305_p9 = pneg %p5304_p8 }
  0x60   : > { %p5310_p11 = pnand %p5308_p10, %p5305_p9 }
  0x62   : > { %5313 = shalt.err (!%p5310_p11)
}
  0x63   : > { %s5314_s23 = scalar_lea.vmem %s544_s15, 16384  ;;  %p5322_p1 = scmp.lt.s32.totalorder %s544_s15, %s544_s15 }
  0x64   : > { %p5315_p12 = scmp.ne.s32.totalorder %s544_s15, %s5314_s23  ;;  %p5323_p4 = scmp.lt.s32.totalorder %s5314_s23, %s5314_s23 }
  0x66   : > { %p5317_p13 = pnand %p5315_p12, %p5538_p7  ;;  %p5324_p6 = por %p5323_p4, %p5322_p1 }
  0x68   : > { %p5318_p0 = pneg %p5317_p13 }
  0x6a   : > { %p5325_p3 = pnand %p5324_p6, %p5318_p0 }
  0x6c   : > { %5328 = shalt.err (!%p5325_p3)
}
  0x6d   : > { %s5384_s7 = smov 64   ;;  %s5385_s8 = smov 4  }
  0x6e   : > { %4884 = dma.hbm_to_vmem [thread:$0]  (!%p5526_p5), %s6208_s14, 16384, %s544_s15, [#allocation6], %s5384_s7, %s5384_s7, %s5385_s8  }
  0x6f   : > { %p6209_p2 = scmp.ne.s32.totalorder %s6200_s22, 0 }
  0x70   : > { %p6210_p8 = scmp.ne.s32.totalorder (!%p6209_p2), %s6199_s21, 0 }
  0x71   : > { %604 = sbr.rel (%p6209_p2) target bundleno = 4648 (0x1228), region = 92 }
  0x78   : > { %5350 = dma.done.wait (%p6210_p8), [#allocation4], 12288  }
  0x79   : > { %5352 = vsyncadd (%p6210_p8), [#allocation4], 4294955008 }
  0x7a   : > { %5354 = dma.done.wait (%p6210_p8), [#allocation6], 32768  }
  0x7b   : > { %5356 = vsyncadd (%p6210_p8), [#allocation6], 4294934528  ;;  %p684_p5 = scmp.lt.s32.totalorder %s5363_s28, 1  ;;  %s4264_s2 = sshll.u32 %s5363_s28, 1 }
  0x7c   : > { %s5611_s22 = sadd.s32 %s5359_s27, %s4264_s2  ;;  %s6211_s0 = sld [smem:[#allocation14_spill]] }
  0x7d   : > { %s6236_s28 = smov (!%p684_p5, %s5363_s28), 1  ;;  %s6212_s13 = sld [smem:[#allocation15_spill]] }
  0x7e   : > { %s4441_s20 = sshll.u32 %s6236_s28, 5  ;;  %s4442_s11 = sshll.u32 %s6236_s28, 4 }
  0x7f   : > { %s6213_s8 = sld [smem:[#allocation16_spill]]  ;;  %s5631_s6 = scalar_lea.vmem %s6163_s3, %s4442_s11 }
  0x80   : > { %s704_s26 = scalar_lea.vmem %s6176_s16, %s6236_s28  ;;  %s4263_s15 = sshll.u32 %s6236_s28, 1 }
  0x81   : > { %s5645_s24 = scalar_lea.vmem %s6178_s18, %s4263_s15  ;;  %p4265_p7 = scmp.ne.s32.totalorder %s5359_s27, 0 }
  0x82   : > { %s688_s25 = scalar_lea.vmem %s6211_s0, %s4441_s20  ;;  %s707_s20 = scalar_lea.vmem %s6177_s17, %s6236_s28  ;;  %vm754_vm0 = vcmask (!%p4265_p7), 1046528   ;;  %vm747_vm1 = vcmask (!%p4265_p7), 244736   ;;  %v807_v9 = vlaneseq (!%p4265_p7)  ;;  %v824_v15 = vld [vmem:[%s5631_s6] sm:$0xff] (!%p4265_p7)  ;;  %v825_v21 = vld [vmem:[%s5631_s6 + $0x8] sm:$0xff] (!%p4265_p7) }
  0x83   : > { %s693_s10 = scalar_lea.vmem %s6212_s13, %s4442_s11  ;;  %718 = sbr.rel (%p4265_p7) target bundleno = 362 (0x16a), region = 108  ;;  %v719_v2 = vld [vmem:[%s688_s25] sm:$0xff] (!%p4265_p7)  ;;  %v720_v3 = vld [vmem:[%s688_s25 + $0x8] sm:$0xff] (!%p4265_p7)  ;;  %v721_v5 = vld [vmem:[%s688_s25 + $0x10] sm:$0xff] (!%p4265_p7) }
  0x84   : > { %v4945_v0 = vld [vmem:[%s693_s10] sm:$0xff] (!%p4265_p7)   ;;  %v4946_v1 = vld [vmem:[%s693_s10 + $0x8] sm:$0x7f] (!%p4265_p7)   ;;  %v723_v4 = vpack.c.bf16 (!%p4265_p7), %v720_v3, %v719_v2  ;;  %v722_v6 = vld [vmem:[%s688_s25 + $0x18] sm:$0xff] (!%p4265_p7)  ;;  %v808_v10 = vshrl.u32 (!%p4265_p7), %v807_v9, 7 }
  0x85   : > { %s696_s9 = scalar_lea.vmem %s6213_s8, %s6236_s28  ;;  %4598 = vmatprep.subr.bf16.mxu0 (!%p4265_p7), %v4945_v0  ;;  %v756_v7 = vsel (!%p4265_p7), %vm754_vm0, %v4946_v1, 0  ;;  %v724_v8 = vpack.c.bf16 (!%p4265_p7), %v722_v6, %v721_v5 }
  0x86   : > { %4599 = vmatpush3.bf16.msra.mxu0 (!%p4265_p7), %v4945_v0  ;;  %4602 = vmatprep.mubr.msk.bf16.mxu0 (!%p4265_p7), %vm747_vm1, %v723_v4  ;;  %v4266_v11 = vld [vmem:[%s696_s9] ss:$0 sm:$0xff] (!%p4265_p7)  ;;  %v809_v12 = vadd.s32 (!%p4265_p7), 8, %v808_v10  ;;  %vm810_vm2 = vcmp.ge.s32.totalorder (!%p4265_p7), %v808_v10, 1 }
  0x87   : > { %4862 = vmatprep.subr.msk.bf16.mxu0 (!%p4265_p7), %vm754_vm0, %v4946_v1 }
  0x88   : > { %vm813_vm3 = vcmp.le.s32.totalorder (!%p4265_p7), %v809_v12, 8 }
  0x8a   : > { %4601 = vmatpush3.bf16.msra.mxu0 %v756_v7 }
  0x8d   : > { %4603 = vmatmul.mubr.msk.bf16.vlgmr.msra.gmra.mrb[0].mxu0 %vm747_vm1, %v724_v8 }
 0x160   : > { %v4604_v13 = vpop.f32.mrb[0].mxu0 }
 0x161   : > { %v801_v14 = vadd.f32 %v4604_v13, %v4266_v11  ;;  %v792_v16 = vpop.f32.mrb[1].mxu0 }
 0x162   : > { %v793_v17 = vadd.f32 %v4266_v11, %v792_v16  ;;  %v4605_v18 = vpop.f32.mrb[2].mxu0 }
 0x163   : > { %v822_v19 = vsel %vm810_vm2, %v801_v14, 0.0  ;;  %v804_v20 = vadd.f32 %v4605_v18, %v4266_v11  ;;  %v795_v22 = vpop.f32.mrb[3].mxu0 }
 0x164   : > { %v828_v23 = vadd.f32 %v824_v15, %v822_v19  ;;  %v820_v24 = vsel %vm810_vm2, %v793_v17, 0.0  ;;  %v796_v25 = vadd.f32 %v4266_v11, %v795_v22 }
 0x165   : > { %v826_v26 = vadd.f32 %v824_v15, %v820_v24  ;;  %v823_v27 = vsel %vm813_vm3, %v804_v20, 0.0 }
 0x166   : > { %832 = vst [vmem:[#allocation2 + $0x10] sm:$0xff] %v828_v23  ;;  %v829_v28 = vadd.f32 %v825_v21, %v823_v27  ;;  %v821_v29 = vsel %vm813_vm3, %v796_v25, 0.0 }
 0x167   : > { %830 = vst [vmem:[#allocation2] sm:$0xff] %v826_v26  ;;  %v827_v30 = vadd.f32 %v825_v21, %v821_v29 }
 0x168   : > { %833 = vst [vmem:[#allocation2 + $0x18] sm:$0xff] %v829_v28 }
 0x169   : > { %831 = vst [vmem:[#allocation2 + $0x8] sm:$0xff] %v827_v30 }
 0x16a PF: > { %s4444_s6 = smul.u32 192, %s5611_s22  ;;  %v5386_v6 = vmov 0   ;;  %s838_s11 = scalar_lea.vmem %s6164_s4, %s5611_s22  ;;  %vm1216_vm4 = vcmask 261120   ;;  %vm1399_vm7 = vcmask 130048  }
 0x16b   : > { %1123 = vmatprep.mubr.bf16.mxu0 %v5386_v6  ;;  %v4271_v26 = vld [vmem:[%s838_s11] ss:$0 sm:$0xff]  ;;  %s840_s10 = scalar_lea.vmem %s6165_s5, %s5611_s22  ;;  %s944_s23 = smul.u32 3, %s5611_s22  ;;  %vm5728_vm5 = vmpackc.low %vm1216_vm4, %vm1216_vm4 }
 0x16c   : > { %s5651_s14 = scalar_lea.vmem [#allocation3], %s4444_s6  ;;  %s6214_s9 = sld [smem:[#allocation18_spill]] }
 0x16d   : > { %v836_v32 = vld [vmem:[#allocation2 + $0x10] sm:$0xff]  ;;  %v5009_v36 = vld [vmem:[%s5651_s14] ss:$12 sps:$4 sm:$0xff]   ;;  %v5010_v37 = vld [vmem:[%s5651_s14 + $0x1c] ss:$12 sps:$4 sm:$0xff]   ;;  %s5388_s2 = smov 96  }
 0x16e   : > { %v834_v31 = vld [vmem:[#allocation2] sm:$0xff]  ;;  %846 = vadd.xlane.f32.xlu1 %v836_v32  ;;  %v5012_v38 = vld [vmem:[%s5651_s14 + $0x8] ss:$12 sps:$4 sm:$0xff]   ;;  %v5017_v58 = vld [vmem:[%s5651_s14 + $0x30] ss:$12 sps:$4 sm:$0xff]   ;;  %s5389_s21 = smov 64  }
 0x16f   : > { %842 = vadd.xlane.f32.xlu0 %v834_v31  ;;  %v837_v34 = vld [vmem:[#allocation2 + $0x18] sm:$0xff]  ;;  %v5007_v35 = vld [vmem:[%s5651_s14 + $0x4] ss:$12 sps:$4 sm:$0xff]   ;;  %4606 = vmatprep.subr.bf16.mxu1 %v5012_v38  ;;  %v5014_v56 = vld [vmem:[%s5651_s14 + $0x34] ss:$12 sps:$4 sm:$0xff]   ;;  %s4445_s15 = sshll.u32 %s5611_s22, 6 }
 0x170   : > { %v835_v33 = vld [vmem:[#allocation2 + $0x8] sm:$0xff]  ;;  %1091 = vmatprep.subr.bf16.mxu0 %v5007_v35  ;;  %4607 = vmatpush3.bf16.msra.mxu1 %v5012_v38  ;;  %v5013_v55 = vld [vmem:[%s5651_s14 + $0x18] ss:$12 sps:$4 sm:$0xff]   ;;  %v5024_v63 = vld [vmem:[%s5651_s14 + $0x50] ss:$12 sps:$4 sm:$0xff]   ;;  %s6217_s6 = sld [smem:[#allocation19_spill]] }
 0x171   : > { %1092 = vmatpush1.bf16.msra.mxu0 %v5009_v36  ;;  %v5016_v57 = vld [vmem:[%s5651_s14 + $0x20] ss:$12 sps:$4 sm:$0xff]   ;;  %v5020_v60 = vld [vmem:[%s5651_s14 + $0x38] ss:$12 sps:$4 sm:$0xff]   ;;  %v5021_v61 = vld [vmem:[%s5651_s14 + $0x48] ss:$12 sps:$4 sm:$0xff]  }
 0x172   : > { %848 = vadd.xlane.f32.xlu1 %v837_v34  ;;  %1093 = vmatprep.subr.bf16.mxu0 %v5010_v37  ;;  %v5018_v59 = vld [vmem:[%s5651_s14 + $0x4c] ss:$12 sps:$4 sm:$0xff]   ;;  %v5022_v62 = vld [vmem:[%s5651_s14 + $0x64] ss:$12 sps:$4 sm:$0xff]   ;;  %v5026_v1 = vld [vmem:[%s5651_s14 + $0x7c] ss:$12 sps:$4 sm:$0xff]   ;;  %s945_s12 = scalar_lea.vmem %s6214_s9, %s944_s23 }
 0x173   : > { %844 = vadd.xlane.f32.xlu0 %v835_v33  ;;  %4608 = vmatprep.subr.bf16.mxu1 %v5016_v57  ;;  %v5025_v0 = vld [vmem:[%s5651_s14 + $0x60] ss:$12 sps:$4 sm:$0xff]   ;;  %v5028_v2 = vld [vmem:[%s5651_s14 + $0x68] ss:$12 sps:$4 sm:$0xff]   ;;  %v5029_v3 = vld [vmem:[%s5651_s14 + $0x78] ss:$12 sps:$4 sm:$0xff]  }
 0x174   : > { %4609 = vmatpush3.bf16.msra.mxu1 %v5016_v57  ;;  %v5030_v4 = vld [vmem:[%s5651_s14 + $0x94] ss:$12 sps:$4 sm:$0xff]   ;;  %v5033_v7 = vld [vmem:[%s5651_s14 + $0x90] ss:$12 sps:$4 sm:$0xff]   ;;  %v5034_v8 = vld [vmem:[%s5651_s14 + $0xac] ss:$12 sps:$4 sm:$0xff]  }
 0x175   : > { %1094 = vmatpush1.bf16.msra.mxu0 %v5013_v55  ;;  %4610 = vmatprep.subr.bf16.mxu1 %v5020_v60  ;;  %v5032_v5 = vld [vmem:[%s5651_s14 + $0x80] ss:$12 sps:$4 sm:$0xff]   ;;  %v5036_v9 = vld [vmem:[%s5651_s14 + $0x98] ss:$12 sps:$4 sm:$0xff]   ;;  %v5037_v10 = vld [vmem:[%s5651_s14 + $0xa8] ss:$12 sps:$4 sm:$0xff]  }
 0x176   : > { %1095 = vmatprep.subr.bf16.mxu0 %v5014_v56  ;;  %v5038_v11 = vld [vmem:[%s5651_s14 + $0xb0] ss:$12 sps:$4 sm:$0xff]   ;;  %s5866_s14 = scalar_lea.vmem %s6217_s6, %s4445_s15  ;;  %s5390_s30 = smov 32  }
 0x177   : > { %s6218_s25 = sld [smem:[#allocation20_spill]]  ;;  %s6220_s0 = sld [smem:[#allocation22_spill]] }
 0x178   : > { %4611 = vmatpush3.bf16.msra.mxu1 %v5020_v60  ;;  %s4369_s6 = sshll.u32 %s5611_s22, 2  ;;  %s6221_s19 = sld [smem:[#allocation24_spill]] }
 0x179   : > { %1096 = vmatpush1.bf16.msra.mxu0 %v5017_v58  ;;  %4612 = vmatprep.subr.bf16.mxu1 %v5024_v63  ;;  %p4436_p9 = scmp.ne.s32.totalorder %s5359_s27, 1 }
 0x17a   : > { %1097 = vmatprep.subr.bf16.mxu0 %v5018_v59  ;;  %vm4002_vm8 = vcmask (!%p4436_p9), 1041409   ;;  %vm4005_vm9 = vcmask (!%p4436_p9), 1041408  }
 0x17c   : > { %4613 = vmatpush3.bf16.msra.mxu1 %v5024_v63 }
 0x17d   : > { %1098 = vmatpush1.bf16.msra.mxu0 %v5021_v61  ;;  %4614 = vmatprep.subr.bf16.mxu1 %v5028_v2  ;;  %s3122_s13 = scalar_lea.vmem %s6218_s25, %s5611_s22  ;;  %s3136_s1 = scalar_lea.vmem %s6220_s0, %s5611_s22 }
 0x17e   : > { %1099 = vmatprep.subr.bf16.mxu0 %v5022_v62  ;;  %s3240_s11 = scalar_lea.vmem %s6221_s19, %s4369_s6 }
 0x180   : > { %4615 = vmatpush3.bf16.msra.mxu1 %v5028_v2 }
 0x181   : > { %1100 = vmatpush1.bf16.msra.mxu0 %v5025_v0  ;;  %4616 = vmatprep.subr.bf16.mxu1 %v5032_v5 }
 0x182   : > { %1101 = vmatprep.subr.bf16.mxu0 %v5026_v1 }
 0x184   : > { %4617 = vmatpush3.bf16.msra.mxu1 %v5032_v5 }
 0x185   : > { %1102 = vmatpush1.bf16.msra.mxu0 %v5029_v3  ;;  %4618 = vmatprep.subr.bf16.mxu1 %v5036_v9 }
 0x186   : > { %1103 = vmatprep.subr.bf16.mxu0 %v5030_v4 }
 0x188   : > { %4619 = vmatpush3.bf16.msra.mxu1 %v5036_v9 }
 0x189   : > { %1104 = vmatpush1.bf16.msra.mxu0 %v5033_v7  ;;  %4620 = vmatprep.subr.bf16.mxu1 %v5038_v11 }
 0x18a   : > { %1105 = vmatprep.subr.bf16.mxu0 %v5034_v8 }
 0x18c   : > { %4621 = vmatpush3.bf16.msra.mxu1 %v5038_v11 }
 0x18d   : > { %1106 = vmatpush1.bf16.msra.mxu0 %v5037_v10 }
 0x1fb   : > { %v847_v40 = vpop.xlane.xlu1 %846 }
 0x1fc   : > { %v843_v39 = vpop.xlane.xlu0 %842  ;;  %v853_v42 = vmul.f32 0.0078125, %v847_v40 }
 0x1fd   : > { %v851_v41 = vmul.f32 0.0078125, %v843_v39 }
 0x1fe   : > { %v5659_v44 = vsub.f32 %v836_v32, %v853_v42 }
 0x1ff   : > { %v5657_v43 = vsub.f32 %v834_v31, %v851_v41  ;;  %v849_v46 = vpop.xlane.xlu1 %848  ;;  %v4272_v31 = vld [vmem:[%s840_s10] ss:$0 sm:$0xff]  ;;  %s4446_s10 = sshll.u32 %s5611_s22, 8 }
 0x200   : > { %v845_v45 = vpop.xlane.xlu0 %844  ;;  %v854_v49 = vmul.f32 0.0078125, %v849_v46  ;;  %v861_v52 = vmul.f32 %v5659_v44, %v5659_v44  ;;  %s5973_s23 = scalar_lea.vmem [#allocation5], %s4446_s10  ;;  %s5983_s7 = scalar_lea.vmem [#allocation7], %s4446_s10 }
 0x201   : > { %v852_v47 = vmul.f32 0.0078125, %v845_v45  ;;  %v859_v48 = vmul.f32 %v5657_v43, %v5657_v43  ;;  %s6222_s10 = sld [smem:[#allocation26_spill]] }
 0x202   : > { %v5665_v51 = vsub.f32 %v837_v34, %v854_v49 }
 0x203   : > { %v5663_v50 = vsub.f32 %v835_v33, %v852_v47  ;;  %863 = vadd.xlane.f32.xlu0 %v859_v48  ;;  %v946_v47 = vld [vmem:[%s945_s12] sm:$0x7]  ;;  %s6219_s12 = sld [smem:[#allocation21_spill]] }
 0x204   : > { %v862_v54 = vmul.f32 %v5665_v51, %v5665_v51 }
 0x205   : > { %v860_v53 = vmul.f32 %v5663_v50, %v5663_v50 }
 0x207   : > { %867 = vadd.xlane.f32.xlu0 %v861_v52  ;;  %865 = vadd.xlane.f32.xlu1 %v860_v53 }
 0x20b   : > { %869 = vadd.xlane.f32.xlu1 %v862_v54 }
 0x290   : > { %v864_v12 = vpop.xlane.xlu0 %863 }
 0x291   : > { %v871_v13 = vmul.f32 0.0078125, %v864_v12 }
 0x293   : > { %v875_v14 = vadd.f32 1e-05, %v871_v13 }
 0x294   : > { %v866_v15 = vpop.xlane.xlu1 %865  ;;  %v868_v16 = vpop.xlane.xlu0 %867 }
 0x295   : > { %5127 = vrsqrt.f32 %v875_v14  ;;  %v872_v17 = vmul.f32 0.0078125, %v866_v15  ;;  %v873_v18 = vmul.f32 0.0078125, %v868_v16 }
 0x297   : > { %v876_v19 = vadd.f32 1e-05, %v872_v17  ;;  %v877_v20 = vadd.f32 1e-05, %v873_v18 }
 0x298   : > { %v870_v21 = vpop.xlane.xlu1 %869 }
 0x299   : > { %5129 = vrsqrt.f32 %v876_v19  ;;  %v874_v22 = vmul.f32 0.0078125, %v870_v21 }
 0x29a   : > { %5131 = vrsqrt.f32 %v877_v20 }
 0x29b   : > { %v878_v23 = vadd.f32 1e-05, %v874_v22 }
 0x29d   : > { %5133 = vrsqrt.f32 %v878_v23 }
 0x29f   : > { %v5128_v24 = vpop.eup %5127 }
 0x2a0   : > { %v883_v25 = vmul.f32 %v5128_v24, %v5657_v43  ;;  %v5387_v24 = vmov -1e+30  }
 0x2a2   : > { %v893_v30 = vmul.f32 %v4271_v26, %v883_v25 }
 0x2a3   : > { %v5130_v27 = vpop.eup %5129 }
 0x2a4   : > { %v5132_v28 = vpop.eup %5131  ;;  %v884_v29 = vmul.f32 %v5130_v27, %v5663_v50  ;;  %v903_v35 = vadd.f32 %v4272_v31, %v893_v30 }
 0x2a5   : > { %v885_v32 = vmul.f32 %v5132_v28, %v5659_v44  ;;  %v948_v44 = vlaneseq }
 0x2a6   : > { %v894_v33 = vmul.f32 %v4271_v26, %v884_v29 }
 0x2a7   : > { %v5134_v34 = vpop.eup %5133  ;;  %v895_v38 = vmul.f32 %v4271_v26, %v885_v32  ;;  %v5708_v45 = vshrl.u32 %v948_v44, 7  ;;  %v1194_v23 = vand.u32 127, %v948_v44 }
 0x2a8   : > { %v904_v36 = vadd.f32 %v4272_v31, %v894_v33  ;;  %v886_v37 = vmul.f32 %v5134_v34, %v5665_v51 }
 0x2a9   : > { %v905_v41 = vadd.f32 %v4272_v31, %v895_v38  ;;  %v950_v46 = vsub.s32 0, %v5708_v45  ;;  %v954_v48 = vsub.s32 1, %v5708_v45  ;;  %v958_v50 = vsub.s32 2, %v5708_v45 }
 0x2aa   : > { %v907_v39 = vpack.c.bf16 %v904_v36, %v903_v35  ;;  %v896_v40 = vmul.f32 %v4271_v26, %v886_v37  ;;  %vm1195_vm6 = vcmp.lt.s32.totalorder %v1194_v23, 9 }
 0x2ab   : > { %v951_v49 = vrot.slane %v946_v47, %v950_v46  ;;  %v955_v52 = vrot.slane %v946_v47, %v954_v48  ;;  %v959_v57 = vrot.slane %v946_v47, %v958_v50  ;;  %v5763_v25 = vsel %vm1195_vm6, 0.0, %v5387_v24 }
 0x2ac   : > { %1124 = vmatmul.mubr.bf16.vlgmr.msra.gmra.mrb[0].mxu0 %v907_v39  ;;  %4622 = vmatprep.mubr.bf16.mxu1 %v907_v39  ;;  %v906_v42 = vadd.f32 %v4272_v31, %v896_v40 }
 0x2ad   : > { %1133 = vmatprep.mubr.bf16.mxu0 %v5386_v6 }
 0x2ae   : > { %v908_v43 = vpack.c.bf16 %v906_v42, %v905_v41 }
 0x2b0   : > { %4623 = vmatmul.mubr.bf16.vlgmr.msra.gmra.mrb[0].mxu1 %v908_v43 }
 0x2b4   : > { %1134 = vmatmul.mubr.bf16.gmra.mrb[4].mxu0 %v908_v43 }
 0x37f   : > { %v1125_v51 = vpop.f32.mrb[0].mxu0 }
 0x380   : > { %v5720_v53 = vadd.f32 %v1125_v51, %v951_v49  ;;  %v1127_v54 = vpop.f32.mrb[1].mxu0 }
 0x381   : > { %v1129_v55 = vpop.f32.mrb[2].mxu0  ;;  %v1128_v58 = vadd.f32 %v1127_v54, %v955_v52 }
 0x382   : > { %v1131_v56 = vpop.f32.mrb[3].mxu0  ;;  %4630 = vmatprep.mubr.msk.f32.mxu1 %vm1216_vm4, %v5720_v53  ;;  %v5748_v19 = vadd.f32 %v1129_v55, %v951_v49 }
 0x383   : > { %v1132_v59 = vadd.f32 %v1131_v56, %v955_v52  ;;  %v4624_v60 = vpop.f32.mrb[0].mxu1 }
 0x384   : > { %v1178_v61 = vpop.f32.mrb[1].mxu1  ;;  %v1187_v2 = vadd.f32 %v4624_v60, %v959_v57 }
 0x385   : > { %v4625_v63 = vpop.f32.mrb[2].mxu1  ;;  %v4770_v0 = vpack.c.bf16 %v1132_v59, %v1128_v58  ;;  %v5732_v1 = vpack.i.bf16 %v1132_v59, %v1128_v58  ;;  %v1179_v5 = vadd.f32 %v1178_v61, %v959_v57 }
 0x386   : > { %v1190_v3 = vadd.f32 %v4625_v63, %v959_v57  ;;  %v1181_v4 = vpop.f32.mrb[3].mxu1 }
 0x387   : > { %v1182_v7 = vadd.f32 %v1181_v4, %v959_v57  ;;  %v1135_v8 = vpop.f32.mrb[4].mxu0  ;;  %4772 = vmatprep.subr.msk.bf16.mxu1 %vm5728_vm5, %v4770_v0 }
 0x388   : > { %v5736_v9 = vadd.f32 %v1135_v8, %v951_v49  ;;  %v1137_v10 = vpop.f32.mrb[5].mxu0  ;;  %4775 = vmatpush3.bf16.xpose.msk.msra.mxu1 %vm5728_vm5, %v4770_v0  ;;  %v5740_v11 = vpack.c.bf16 %v1190_v3, %v1187_v2  ;;  %v5742_v12 = vpack.i.bf16 %v1190_v3, %v1187_v2 }
 0x389   : > { %v1139_v13 = vpop.f32.mrb[6].mxu0  ;;  %v4782_v14 = vpack.c.bf16 %v1182_v7, %v1179_v5  ;;  %v5744_v15 = vpack.i.bf16 %v1182_v7, %v1179_v5  ;;  %v1138_v17 = vadd.f32 %v1137_v10, %v955_v52 }
 0x38a   : > { %v1141_v16 = vpop.f32.mrb[7].mxu0  ;;  %4637 = vmatprep.mubr.msk.f32.mxu0 %vm1216_vm4, %v5736_v9  ;;  %v5759_v22 = vadd.f32 %v1139_v13, %v951_v49 }
 0x38b   : > { %v1142_v18 = vadd.f32 %v1141_v16, %v955_v52  ;;  %4783 = vmatprep.subr.bf16.mxu1 %v4782_v14 }
 0x38d   : > { %v4776_v20 = vpack.c.bf16 %v1142_v18, %v1138_v17  ;;  %v5750_v21 = vpack.i.bf16 %v1142_v18, %v1138_v17 }
 0x38f   : > { %4631 = vmatmul.mubr.msk.f32.vlgmr.msra.gmra.mrb[4].mxu1 %vm1216_vm4, %v5748_v19  ;;  %4778 = vmatprep.subr.msk.bf16.mxu0 %vm5728_vm5, %v4776_v20 }
 0x390   : > { %4781 = vmatpush3.bf16.xpose.msk.msra.mxu0 %vm5728_vm5, %v4776_v20  ;;  %4785 = vmatpush3.bf16.msra.mxu1 %v4782_v14 }
 0x391   : > { %4787 = vmatprep.subr.bf16.mxu1 %v5740_v11 }
 0x397   : > { %4638 = vmatmul.mubr.msk.f32.vlgmr.msra.gmra.mrb[8].mxu0 %vm1216_vm4, %v5759_v22 }
 0x462   : > { %v4632_v26 = vpop.f32.mrb[4].mxu1 }
 0x463   : > { %v1392_v27 = vmul.f32 0.17677669, %v4632_v26  ;;  %v1295_v28 = vpop.f32.mrb[5].mxu1 }
 0x464   : > { %v1391_v29 = vmul.f32 0.17677669, %v1295_v28 }
 0x465   : > { %v1396_v30 = vadd.f32 %v1392_v27, %v5763_v25 }
 0x466   : > { %v1395_v31 = vadd.f32 %v1391_v29, %v5763_v25 }
 0x467   : > { %v1403_v32 = vsel %vm1399_vm7, %v1396_v30, -inf }
 0x468   : > { %1404 = vmax.xlane.f32.xlu1 %v1403_v32  ;;  %v1400_v33 = vsel %vm1399_vm7, %v1395_v31, -inf }
 0x469   : > { %1401 = vmax.xlane.f32.xlu0 %v1400_v33 }
 0x46a   : > { %v4639_v34 = vpop.f32.mrb[8].mxu0 }
 0x46b   : > { %v1394_v35 = vmul.f32 0.17677669, %v4639_v34  ;;  %v1382_v36 = vpop.f32.mrb[9].mxu0 }
 0x46c   : > { %v1393_v37 = vmul.f32 0.17677669, %v1382_v36 }
 0x46d   : > { %v1398_v38 = vadd.f32 %v1394_v35, %v5763_v25 }
 0x46e   : > { %v1397_v39 = vadd.f32 %v1393_v37, %v5763_v25 }
 0x46f   : > { %v1409_v40 = vsel %vm1399_vm7, %v1398_v38, -inf }
 0x470   : > { %1410 = vmax.xlane.f32.xlu1 %v1409_v40  ;;  %v1406_v41 = vsel %vm1399_vm7, %v1397_v39, -inf }
 0x471   : > { %1407 = vmax.xlane.f32.xlu0 %v1406_v41 }
 0x4f5   : > { %v1405_v42 = vpop.xlane.xlu1 %1404 }
 0x4f6   : > { %v1413_v43 = vsub.f32 %v1396_v30, %v1405_v42  ;;  %v1402_v44 = vpop.xlane.xlu0 %1401 }
 0x4f7   : > { %v1412_v47 = vsub.f32 %v1395_v31, %v1402_v44 }
 0x4f8   : > { %v1418_v49 = vmul.f32 1.442695, %v1413_v43 }
 0x4f9   : > { %v1416_v51 = vmul.f32 1.442695, %v1412_v47 }
 0x4fa   : > { %5135 = vpow2.f32 %v1418_v49 }
 0x4fb   : > { %5137 = vpow2.f32 %v1416_v51 }
 0x4fd   : > { %v1411_v52 = vpop.xlane.xlu1 %1410 }
 0x4fe   : > { %v1415_v54 = vsub.f32 %v1398_v38, %v1411_v52  ;;  %v1408_v55 = vpop.xlane.xlu0 %1407 }
 0x4ff   : > { %v1414_v56 = vsub.f32 %v1397_v39, %v1408_v55 }
 0x500   : > { %v1422_v57 = vmul.f32 1.442695, %v1415_v54 }
 0x501   : > { %v1420_v58 = vmul.f32 1.442695, %v1414_v56 }
 0x502   : > { %5139 = vpow2.f32 %v1422_v57 }
 0x503   : > { %5141 = vpow2.f32 %v1420_v58 }
 0x504   : > { %v5136_v59 = vpop.eup %5135 }
 0x505   : > { %v5138_v60 = vpop.eup %5137  ;;  %v1427_v61 = vsel %vm1399_vm7, %v5136_v59, 0.0 }
 0x506   : > { %1428 = vadd.xlane.f32.xlu1 %v1427_v61  ;;  %v1424_v63 = vsel %vm1399_vm7, %v5138_v60, 0.0 }
 0x507   : > { %1425 = vadd.xlane.f32.xlu0 %v1424_v63 }
 0x50c   : > { %v5140_v0 = vpop.eup %5139 }
 0x50d   : > { %v5142_v2 = vpop.eup %5141  ;;  %v1433_v3 = vsel %vm1399_vm7, %v5140_v0, 0.0 }
 0x50e   : > { %1434 = vadd.xlane.f32.xlu1 %v1433_v3  ;;  %v1430_v4 = vsel %vm1399_vm7, %v5142_v2, 0.0 }
 0x50f   : > { %1431 = vadd.xlane.f32.xlu0 %v1430_v4 }
 0x51f   : > { %1608 = vrot.lane.b32.xlu1 %v5720_v53, %s5388_s2 }
 0x523   : > { %4953 = vrot.lane.b32.xlu1 %v5750_v21, %s5388_s2 }
 0x525   : > { %4948 = vrot.lane.b32.xlu0 %v5732_v1, %s5388_s2 }
 0x527   : > { %1610 = vrot.lane.b32.xlu1 %v5748_v19, %s5388_s2 }
 0x529   : > { %1699 = vrot.lane.b32.xlu0 %v5736_v9, %s5388_s2 }
 0x52b   : > { %1701 = vrot.lane.b32.xlu1 %v5759_v22, %s5388_s2 }
 0x593   : > { %v1429_v5 = vpop.xlane.xlu1 %1428 }
 0x594   : > { %5143 = vrcp.f32 %v1429_v5  ;;  %v1426_v7 = vpop.xlane.xlu0 %1425 }
 0x595   : > { %5145 = vrcp.f32 %v1426_v7 }
 0x59b   : > { %v1435_v8 = vpop.xlane.xlu1 %1434 }
 0x59c   : > { %5147 = vrcp.f32 %v1435_v8  ;;  %v1432_v10 = vpop.xlane.xlu0 %1431 }
 0x59d   : > { %5149 = vrcp.f32 %v1432_v10 }
 0x59e   : > { %v5144_v13 = vpop.eup %5143 }
 0x59f   : > { %v5146_v14 = vpop.eup %5145  ;;  %v1609_v16 = vpop.permute.xlu1 %1608  ;;  %v1439_v20 = vmul.f32 %v5144_v13, %v5136_v59 }
 0x5a0   : > { %4658 = vmatprep.mubr.msk.f32.mxu0 %vm1216_vm4, %v1609_v16  ;;  %v4949_v17 = vpop.permute.xlu0 %4948  ;;  %v1437_v18 = vmul.f32 %v5146_v14, %v5138_v60 }
 0x5a1   : > { %v4951_v23 = vunpack.i.h.bf16 %v4949_v17  ;;  %v4950_v24 = vunpack.i.l.bf16 %v4949_v17 }
 0x5a2   : > { %4644 = vmatprep.mubr.msk.f32.mxu1 %vm1399_vm7, %v1437_v18 }
 0x5a3   : > { %v4790_v26 = vpack.c.bf16 %v4951_v23, %v4950_v24  ;;  %v4954_v27 = vpop.permute.xlu1 %4953  ;;  %4645 = vmatmul.mubr.msk.f32.vlgmr.msra.gmra.mrb[6].mxu1 %vm1399_vm7, %v1439_v20 }
 0x5a4   : > { %v4956_v28 = vunpack.i.h.bf16 %v4954_v27  ;;  %v4955_v29 = vunpack.i.l.bf16 %v4954_v27  ;;  %4789 = vmatpush3.bf16.msra.mxu1 %v5740_v11  ;;  %v1700_v35 = vpop.permute.xlu0 %1699 }
 0x5a5   : > { %4792 = vmatprep.subr.msk.bf16.mxu0 %vm5728_vm5, %v4790_v26 }
 0x5a6   : > { %v5148_v30 = vpop.eup %5147  ;;  %v4796_v31 = vpack.c.bf16 %v4956_v28, %v4955_v29  ;;  %4795 = vmatpush3.bf16.xpose.msk.msra.mxu0 %vm5728_vm5, %v4790_v26 }
 0x5a7   : > { %v5150_v32 = vpop.eup %5149  ;;  %v1443_v34 = vmul.f32 %v5148_v30, %v5140_v0  ;;  %v1611_v11 = vpop.permute.xlu1 %1610 }
 0x5a8   : > { %4798 = vmatprep.subr.msk.bf16.mxu1 %vm5728_vm5, %v4796_v31  ;;  %v1441_v33 = vmul.f32 %v5150_v32, %v5142_v2 }
 0x5aa   : > { %4651 = vmatprep.mubr.msk.f32.mxu1 %vm1399_vm7, %v1441_v33 }
 0x5ab   : > { %4652 = vmatmul.mubr.msk.f32.vlgmr.msra.gmra.mrb[8].mxu1 %vm1399_vm7, %v1443_v34  ;;  %v1702_v36 = vpop.permute.xlu1 %1701 }
 0x5ac   : > { %4665 = vmatprep.mubr.msk.f32.mxu1 %vm1216_vm4, %v1700_v35 }
 0x5ad   : > { %4801 = vmatpush3.bf16.xpose.msk.msra.mxu1 %vm5728_vm5, %v4796_v31  ;;  %4659 = vmatmul.mubr.msk.f32.vlgmr.msra.gmra.mrb[10].mxu0 %vm1216_vm4, %v1611_v11 }
 0x5b4   : > { %4666 = vmatmul.mubr.msk.f32.vlgmr.msra.gmra.mrb[10].mxu1 %vm1216_vm4, %v1702_v36 }
 0x676   : > { %v5806_v37 = vpop.f32.mrb[6].mxu1 }
 0x677   : > { %v5808_v38 = vpop.f32.mrb[7].mxu1 }
 0x678   : > { %v1606_v39 = vpack.c.bf16 %v5806_v37, %v5808_v38 }
 0x67e   : > { %v5812_v40 = vpop.f32.mrb[8].mxu1 }
 0x67f   : > { %v5814_v41 = vpop.f32.mrb[9].mxu1 }
 0x680   : > { %v1607_v42 = vpack.c.bf16 %v5812_v40, %v5814_v41  ;;  %v4660_v43 = vpop.f32.mrb[10].mxu0 }
 0x681   : > { %v1791_v44 = vmul.f32 0.17677669, %v4660_v43  ;;  %v1690_v47 = vpop.f32.mrb[11].mxu0 }
 0x682   : > { %v1790_v49 = vmul.f32 0.17677669, %v1690_v47 }
 0x683   : > { %v1795_v51 = vadd.f32 %v1791_v44, %v5763_v25 }
 0x684   : > { %v1794_v52 = vadd.f32 %v1790_v49, %v5763_v25 }
 0x685   : > { %v1801_v54 = vsel %vm1399_vm7, %v1795_v51, -inf }
 0x686   : > { %1802 = vmax.xlane.f32.xlu1 %v1801_v54  ;;  %v1798_v55 = vsel %vm1399_vm7, %v1794_v52, -inf }
 0x687   : > { %v4667_v56 = vpop.f32.mrb[10].mxu1  ;;  %1799 = vmax.xlane.f32.xlu0 %v1798_v55 }
 0x688   : > { %v1781_v57 = vpop.f32.mrb[11].mxu1  ;;  %v1793_v58 = vmul.f32 0.17677669, %v4667_v56 }
 0x689   : > { %v1792_v59 = vmul.f32 0.17677669, %v1781_v57 }
 0x68a   : > { %v1797_v63 = vadd.f32 %v1793_v58, %v5763_v25 }
 0x68b   : > { %v1796_v60 = vadd.f32 %v1792_v59, %v5763_v25 }
 0x68c   : > { %v1807_v0 = vsel %vm1399_vm7, %v1797_v63, -inf }
 0x68d   : > { %v1804_v61 = vsel %vm1399_vm7, %v1796_v60, -inf }
 0x68e   : > { %1805 = vmax.xlane.f32.xlu0 %v1804_v61 }
 0x692   : > { %1808 = vmax.xlane.f32.xlu0 %v1807_v0 }
 0x713   : > { %v1803_v2 = vpop.xlane.xlu1 %1802 }
 0x714   : > { %v1811_v3 = vsub.f32 %v1795_v51, %v1803_v2  ;;  %v1800_v4 = vpop.xlane.xlu0 %1799 }
 0x715   : > { %v1810_v5 = vsub.f32 %v1794_v52, %v1800_v4 }
 0x716   : > { %v1816_v7 = vmul.f32 1.442695, %v1811_v3 }
 0x717   : > { %v1814_v8 = vmul.f32 1.442695, %v1810_v5 }
 0x718   : > { %5151 = vpow2.f32 %v1816_v7 }
 0x719   : > { %5153 = vpow2.f32 %v1814_v8 }
 0x71b   : > { %v1806_v10 = vpop.xlane.xlu0 %1805 }
 0x71c   : > { %v1812_v13 = vsub.f32 %v1796_v60, %v1806_v10 }
 0x71e   : > { %v1818_v14 = vmul.f32 1.442695, %v1812_v13 }
 0x71f   : > { %v1809_v16 = vpop.xlane.xlu0 %1808 }
 0x720   : > { %5155 = vpow2.f32 %v1818_v14  ;;  %v1813_v17 = vsub.f32 %v1797_v63, %v1809_v16  ;;  %v5039_v16 = vld [vmem:[%s5866_s14 + $0x10] sm:$0xff]  }
 0x721   : > { %4682 = vmatprep.subr.bf16.mxu0 %v5039_v16 }
 0x722   : > { %v5152_v18 = vpop.eup %5151  ;;  %v1820_v20 = vmul.f32 1.442695, %v1813_v17  ;;  %4683 = vmatpush3.bf16.msra.mxu0 %v5039_v16  ;;  %v5040_v17 = vld [vmem:[%s5866_s14 + $0x18] sm:$0xff]  }
 0x723   : > { %v5154_v23 = vpop.eup %5153  ;;  %v1825_v24 = vsel %vm1399_vm7, %v5152_v18, 0.0  ;;  %4684 = vmatprep.subr.bf16.mxu0 %v5040_v17 }
 0x724   : > { %5157 = vpow2.f32 %v1820_v20  ;;  %1826 = vadd.xlane.f32.xlu1 %v1825_v24  ;;  %v1822_v26 = vsel %vm1399_vm7, %v5154_v23, 0.0 }
 0x725   : > { %1823 = vadd.xlane.f32.xlu0 %v1822_v26 }
 0x726   : > { %4685 = vmatpush3.bf16.msra.mxu0 %v5040_v17 }
 0x72a   : > { %v5156_v27 = vpop.eup %5155 }
 0x72b   : > { %v1828_v28 = vsel %vm1399_vm7, %v5156_v27, 0.0 }
 0x72c   : > { %1829 = vadd.xlane.f32.xlu0 %v1828_v28 }
 0x72e   : > { %v5158_v29 = vpop.eup %5157 }
 0x72f   : > { %v1831_v30 = vsel %vm1399_vm7, %v5158_v29, 0.0 }
 0x730   : > { %1832 = vadd.xlane.f32.xlu1 %v1831_v30 }
 0x741   : > { %4963 = vrot.lane.b32.xlu1 %v5742_v12, %s5388_s2 }
 0x742   : > { %4958 = vrot.lane.b32.xlu0 %v5744_v15, %s5388_s2  ;;  %s3134_s2 = scalar_lea.vmem %s6219_s12, %s5611_s22 }
 0x745   : > { %4968 = vrot.lane.b32.xlu1 %v5732_v1, %s5389_s21 }
 0x746   : > { %2158 = vrot.lane.b32.xlu0 %v5748_v19, %s5389_s21 }
 0x749   : > { %2156 = vrot.lane.b32.xlu1 %v5720_v53, %s5389_s21 }
 0x74a   : > { %2247 = vrot.lane.b32.xlu0 %v5736_v9, %s5389_s21 }
 0x74d   : > { %4973 = vrot.lane.b32.xlu1 %v5750_v21, %s5389_s21 }
 0x751   : > { %2249 = vrot.lane.b32.xlu1 %v5759_v22, %s5389_s21 }
 0x7b1   : > { %v1827_v32 = vpop.xlane.xlu1 %1826 }
 0x7b2   : > { %v1824_v31 = vpop.xlane.xlu0 %1823 }
 0x7b3   : > { %5159 = vrcp.f32 %v1824_v31 }
 0x7b4   : > { %5161 = vrcp.f32 %v1827_v32 }
 0x7b9   : > { %v1830_v33 = vpop.xlane.xlu0 %1829 }
 0x7ba   : > { %5163 = vrcp.f32 %v1830_v33 }
 0x7bd   : > { %v5160_v34 = vpop.eup %5159  ;;  %v1833_v35 = vpop.xlane.xlu1 %1832 }
 0x7be   : > { %v4959_v11 = vpop.permute.xlu0 %4958  ;;  %5165 = vrcp.f32 %v1833_v35  ;;  %v1835_v44 = vmul.f32 %v5160_v34, %v5154_v23  ;;  %v5162_v49 = vpop.eup %5161 }
 0x7bf   : > { %v4961_v36 = vunpack.i.h.bf16 %v4959_v11  ;;  %v4960_v43 = vunpack.i.l.bf16 %v4959_v11  ;;  %v1837_v56 = vmul.f32 %v5162_v49, %v5152_v18  ;;  %v5041_v18 = vld [vmem:[%s5866_s14] sm:$0xff]  }
 0x7c0   : > { %4672 = vmatprep.mubr.msk.f32.mxu1 %vm1399_vm7, %v1835_v44  ;;  %4690 = vmatprep.subr.bf16.mxu0 %v5041_v18 }
 0x7c1   : > { %v4802_v47 = vpack.c.bf16 %v4961_v36, %v4960_v43  ;;  %v4964_v51 = vpop.permute.xlu1 %4963 }
 0x7c2   : > { %v4966_v52 = vunpack.i.h.bf16 %v4964_v51  ;;  %v4965_v54 = vunpack.i.l.bf16 %v4964_v51  ;;  %v2159_v10 = vpop.permute.xlu0 %2158 }
 0x7c3   : > { %4803 = vmatprep.subr.bf16.mxu1 %v4802_v47 }
 0x7c4   : > { %4805 = vmatpush3.bf16.msra.mxu1 %v4802_v47  ;;  %v5164_v55 = vpop.eup %5163  ;;  %v4806_v57 = vpack.c.bf16 %v4966_v52, %v4965_v54 }
 0x7c5   : > { %v4969_v58 = vpop.permute.xlu1 %4968  ;;  %v1839_v59 = vmul.f32 %v5164_v55, %v5156_v27 }
 0x7c6   : > { %v4971_v60 = vunpack.i.h.bf16 %v4969_v58  ;;  %v4970_v61 = vunpack.i.l.bf16 %v4969_v58  ;;  %4807 = vmatprep.subr.bf16.mxu1 %v4806_v57  ;;  %v2248_v13 = vpop.permute.xlu0 %2247 }
 0x7c7   : > { %4673 = vmatmul.mubr.msk.f32.vlgmr.msra.gmra.mrb[12].mxu1 %vm1399_vm7, %v1837_v56 }
 0x7c8   : > { %4809 = vmatpush3.bf16.msra.mxu1 %v4806_v57  ;;  %4679 = vmatprep.mubr.msk.f32.mxu1 %vm1399_vm7, %v1839_v59  ;;  %v5166_v63 = vpop.eup %5165  ;;  %v4810_v0 = vpack.c.bf16 %v4971_v60, %v4970_v61 }
 0x7c9   : > { %v1841_v2 = vmul.f32 %v5166_v63, %v5158_v29  ;;  %v2157_v3 = vpop.permute.xlu1 %2156  ;;  %v5042_v29 = vld [vmem:[%s5866_s14 + $0x8] sm:$0xff]  }
 0x7ca   : > { %4812 = vmatprep.subr.msk.bf16.mxu1 %vm5728_vm5, %v4810_v0 }
 0x7cb   : > { %4680 = vmatmul.mubr.msk.f32.vlgmr.msra.gmra.mrb[14].mxu1 %vm1399_vm7, %v1841_v2 }
 0x7cc   : > { %4702 = vmatprep.mubr.msk.f32.mxu1 %vm1216_vm4, %v2157_v3 }
 0x7cd   : > { %v4974_v4 = vpop.permute.xlu1 %4973 }
 0x7ce   : > { %v4976_v5 = vunpack.i.h.bf16 %v4974_v4  ;;  %v4975_v7 = vunpack.i.l.bf16 %v4974_v4 }
 0x7d0   : > { %v4816_v8 = vpack.c.bf16 %v4976_v5, %v4975_v7 }
 0x7d1   : > { %4815 = vmatpush3.bf16.xpose.msk.msra.mxu1 %vm5728_vm5, %v4810_v0  ;;  %v2250_v14 = vpop.permute.xlu1 %2249 }
 0x7d2   : > { %4818 = vmatprep.subr.msk.bf16.mxu1 %vm5728_vm5, %v4816_v8 }
 0x7d8   : > { %4703 = vmatmul.mubr.msk.f32.vlgmr.msra.gmra.mrb[16].mxu1 %vm1216_vm4, %v2159_v10 }
 0x7d9   : > { %4821 = vmatpush3.bf16.xpose.msk.msra.mxu1 %vm5728_vm5, %v4816_v8  ;;  %4709 = vmatprep.mubr.msk.f32.mxu1 %vm1216_vm4, %v2248_v13 }
 0x7e0   : > { %4710 = vmatmul.mubr.msk.f32.vlgmr.msra.gmra.mrb[18].mxu1 %vm1216_vm4, %v2250_v14 }
 0x89a   : > { %v4674_v20 = vpop.f32.mrb[12].mxu1 }
 0x89b   : > { %v1922_v23 = vpop.f32.mrb[13].mxu1 }
 0x89c   : > { %v2020_v24 = vpack.c.bf16 %v4674_v20, %v1922_v23 }
 0x89e   : > { %4686 = vmatprep.mubr.msk.bf16.mxu0 %vm1216_vm4, %v2020_v24  ;;  %v4681_v26 = vpop.f32.mrb[14].mxu1 }
 0x89f   : > { %v2011_v27 = vpop.f32.mrb[15].mxu1 }
 0x8a0   : > { %v2021_v28 = vpack.c.bf16 %v4681_v26, %v2011_v27 }
 0x8a2   : > { %4687 = vmatmul.mubr.msk.bf16.vlgmr.msra.gmra.mrb[12].mxu0 %vm1216_vm4, %v2021_v28 }
 0x8a3   : > { %4694 = vmatprep.mubr.msk.bf16.mxu0 %vm1216_vm4, %v1606_v39  ;;  %4691 = vmatpush3.bf16.msra.mxu0 %v5041_v18 }
 0x8a4   : > { %4692 = vmatprep.subr.bf16.mxu0 %v5042_v29 }
 0x8a7   : > { %4693 = vmatpush3.bf16.msra.mxu0 %v5042_v29 }
 0x8ab   : > { %v4704_v30 = vpop.f32.mrb[16].mxu1 }
 0x8ac   : > { %v2339_v31 = vmul.f32 0.17677669, %v4704_v30  ;;  %v2238_v32 = vpop.f32.mrb[17].mxu1 }
 0x8ad   : > { %v2338_v33 = vmul.f32 0.17677669, %v2238_v32 }
 0x8ae   : > { %v2343_v34 = vadd.f32 %v2339_v31, %v5763_v25  ;;  %4695 = vmatmul.mubr.msk.bf16.vlgmr.msra.gmra.mrb[12].mxu0 %vm1216_vm4, %v1607_v42 }
 0x8af   : > { %v2342_v35 = vadd.f32 %v2338_v33, %v5763_v25 }
 0x8b0   : > { %v2349_v37 = vsel %vm1399_vm7, %v2343_v34, -inf }
 0x8b1   : > { %2350 = vmax.xlane.f32.xlu1 %v2349_v37  ;;  %v2346_v38 = vsel %vm1399_vm7, %v2342_v35, -inf }
 0x8b2   : > { %2347 = vmax.xlane.f32.xlu0 %v2346_v38 }
 0x8b3   : > { %v4711_v39 = vpop.f32.mrb[18].mxu1 }
 0x8b4   : > { %v2329_v11 = vpop.f32.mrb[19].mxu1  ;;  %v2341_v2 = vmul.f32 0.17677669, %v4711_v39 }
 0x8b5   : > { %v2340_v40 = vmul.f32 0.17677669, %v2329_v11 }
 0x8b6   : > { %v2345_v3 = vadd.f32 %v2341_v2, %v5763_v25 }
 0x8b7   : > { %v2344_v41 = vadd.f32 %v2340_v40, %v5763_v25 }
 0x8b9   : > { %v2352_v42 = vsel %vm1399_vm7, %v2344_v41, -inf }
 0x8c2   : > { %4983 = vrot.lane.b32.xlu1 %v5732_v1, %s5390_s30 }
 0x8c6   : > { %4988 = vrot.lane.b32.xlu1 %v5750_v21, %s5390_s30 }
 0x8ca   : > { %2637 = vrot.lane.b32.xlu1 %v5720_v53, %s5390_s30 }
 0x8ce   : > { %2728 = vrot.lane.b32.xlu1 %v5736_v9, %s5390_s30 }
 0x8f2   : > { %2353 = vmax.xlane.f32.xlu1 %v2352_v42 }
 0x903   : > { %4993 = vrot.lane.b32.xlu1 %v5742_v12, %s5389_s21 }
 0x93e   : > { %v2351_v36 = vpop.xlane.xlu1 %2350 }
 0x93f   : > { %v2359_v1 = vsub.f32 %v2343_v34, %v2351_v36  ;;  %v2348_v43 = vpop.xlane.xlu0 %2347 }
 0x940   : > { %v2358_v44 = vsub.f32 %v2342_v35, %v2348_v43 }
 0x941   : > { %v2364_v21 = vmul.f32 1.442695, %v2359_v1 }
 0x942   : > { %v2362_v47 = vmul.f32 1.442695, %v2358_v44  ;;  %v4984_v52 = vpop.permute.xlu1 %4983 }
 0x943   : > { %5167 = vpow2.f32 %v2364_v21  ;;  %v4986_v10 = vunpack.i.h.bf16 %v4984_v52  ;;  %v4985_v13 = vunpack.i.l.bf16 %v4984_v52 }
 0x944   : > { %5169 = vpow2.f32 %v2362_v47 }
 0x945   : > { %v4830_v18 = vpack.c.bf16 %v4986_v10, %v4985_v13 }
 0x946   : > { %v4989_v54 = vpop.permute.xlu1 %4988 }
 0x947   : > { %v4991_v27 = vunpack.i.h.bf16 %v4989_v54  ;;  %v4990_v28 = vunpack.i.l.bf16 %v4989_v54 }
 0x949   : > { %v4836_v29 = vpack.c.bf16 %v4991_v27, %v4990_v28 }
 0x94a   : > { %v2638_v55 = vpop.permute.xlu1 %2637 }
 0x94d   : > { %v5168_v53 = vpop.eup %5167 }
 0x94e   : > { %v2373_v9 = vsel %vm1399_vm7, %v5168_v53, 0.0  ;;  %v5170_v49 = vpop.eup %5169  ;;  %v2729_v56 = vpop.permute.xlu1 %2728 }
 0x94f   : > { %2374 = vadd.xlane.f32.xlu0 %v2373_v9  ;;  %v2370_v51 = vsel %vm1399_vm7, %v5170_v49, 0.0 }
 0x953   : > { %2371 = vadd.xlane.f32.xlu0 %v2370_v51 }
 0x969   : > { %4978 = vrot.lane.b32.xlu0 %v5744_v15, %s5389_s21 }
 0x96d   : > { %2639 = vrot.lane.b32.xlu0 %v5748_v19, %s5390_s30  ;;  %v2355_v19 = vsel %vm1399_vm7, %v2345_v3, -inf }
 0x971   : > { %2730 = vrot.lane.b32.xlu0 %v5759_v22, %s5390_s30 }
 0x97f   : > { %v2354_v57 = vpop.xlane.xlu1 %2353 }
 0x980   : > { %v2360_v58 = vsub.f32 %v2344_v41, %v2354_v57 }
 0x982   : > { %v2366_v59 = vmul.f32 1.442695, %v2360_v58 }
 0x983   : > { %v4994_v60 = vpop.permute.xlu1 %4993 }
 0x984   : > { %v4996_v61 = vunpack.i.h.bf16 %v4994_v60  ;;  %v4995_v63 = vunpack.i.l.bf16 %v4994_v60  ;;  %5171 = vpow2.f32 %v2366_v59 }
 0x986   : > { %v4826_v0 = vpack.c.bf16 %v4996_v61, %v4995_v63  ;;  %v5043_v61 = vld [vmem:[%s5866_s14 + $0x20] sm:$0xff]   ;;  %v5044_v63 = vld [vmem:[%s5866_s14 + $0x28] sm:$0xff]  }
 0x988   : > { %4827 = vmatprep.subr.bf16.mxu0 %v4826_v0 }
 0x989   : > { %4829 = vmatpush3.bf16.msra.mxu0 %v4826_v0 }
 0x98a   : > { %4726 = vmatprep.subr.bf16.mxu0 %v5043_v61 }
 0x98e   : > { %v5172_v4 = vpop.eup %5171 }
 0x98f   : > { %v2376_v22 = vsel %vm1399_vm7, %v5172_v4, 0.0 }
 0x990   : > { %2356 = vmax.xlane.f32.xlu0 %v2355_v19 }
 0x994   : > { %2377 = vadd.xlane.f32.xlu0 %v2376_v22 }
 0x9dc   : > { %v2375_v5 = vpop.xlane.xlu0 %2374 }
 0x9dd   : > { %5173 = vrcp.f32 %v2375_v5 }
 0x9e0   : > { %v2372_v7 = vpop.xlane.xlu0 %2371 }
 0x9e1   : > { %5175 = vrcp.f32 %v2372_v7 }
 0x9e4   : > { %v4979_v8 = vpop.permute.xlu0 %4978 }
 0x9e5   : > { %v4981_v14 = vunpack.i.h.bf16 %v4979_v8  ;;  %v4980_v16 = vunpack.i.l.bf16 %v4979_v8 }
 0x9e7   : > { %v4822_v17 = vpack.c.bf16 %v4981_v14, %v4980_v16  ;;  %v5174_v20 = vpop.eup %5173 }
 0x9e8   : > { %v2385_v26 = vmul.f32 %v5174_v20, %v5168_v53  ;;  %v2640_v30 = vpop.permute.xlu0 %2639 }
 0x9e9   : > { %4823 = vmatprep.subr.bf16.mxu1 %v4822_v17 }
 0x9ea   : > { %4825 = vmatpush3.bf16.msra.mxu1 %v4822_v17 }
 0x9eb   : > { %v5176_v23 = vpop.eup %5175  ;;  %4832 = vmatprep.subr.msk.bf16.mxu1 %vm5728_vm5, %v4830_v18 }
 0x9ec   : > { %v2383_v24 = vmul.f32 %v5176_v23, %v5170_v49  ;;  %v2731_v31 = vpop.permute.xlu0 %2730 }
 0x9ee   : > { %4716 = vmatprep.mubr.msk.f32.mxu1 %vm1399_vm7, %v2383_v24 }
 0x9ef   : > { %4717 = vmatmul.mubr.msk.f32.vlgmr.msra.gmra.mrb[20].mxu1 %vm1399_vm7, %v2385_v26 }
 0x9f0   : > { %4738 = vmatprep.mubr.msk.f32.mxu1 %vm1216_vm4, %v2638_v55 }
 0x9f3   : > { %4835 = vmatpush3.bf16.xpose.msk.msra.mxu1 %vm5728_vm5, %v4830_v18 }
 0x9f4   : > { %4838 = vmatprep.subr.msk.bf16.mxu1 %vm5728_vm5, %v4836_v29 }
 0x9fa   : > { %4739 = vmatmul.mubr.msk.f32.vlgmr.msra.gmra.mrb[22].mxu1 %vm1216_vm4, %v2640_v30 }
 0x9fb   : > { %4841 = vmatpush3.bf16.xpose.msk.msra.mxu1 %vm5728_vm5, %v4836_v29  ;;  %4745 = vmatprep.mubr.msk.f32.mxu1 %vm1216_vm4, %v2729_v56 }
 0xa02   : > { %4746 = vmatmul.mubr.msk.f32.vlgmr.msra.gmra.mrb[24].mxu1 %vm1216_vm4, %v2731_v31 }
 0xa1d   : > { %v2357_v32 = vpop.xlane.xlu0 %2356 }
 0xa1e   : > { %v2361_v33 = vsub.f32 %v2345_v3, %v2357_v32 }
 0xa20   : > { %v2368_v34 = vmul.f32 1.442695, %v2361_v33 }
 0xa21   : > { %v2378_v35 = vpop.xlane.xlu0 %2377 }
 0xa22   : > { %5177 = vpow2.f32 %v2368_v34 }
 0xa23   : > { %5179 = vrcp.f32 %v2378_v35 }
 0xa2c   : > { %v5178_v37 = vpop.eup %5177 }
 0xa2d   : > { %v5180_v38 = vpop.eup %5179  ;;  %v2379_v39 = vsel %vm1399_vm7, %v5178_v37, 0.0 }
 0xa2e   : > { %2380 = vadd.xlane.f32.xlu0 %v2379_v39  ;;  %v2387_v11 = vmul.f32 %v5180_v38, %v5172_v4 }
 0xa30   : > { %4723 = vmatprep.mubr.msk.f32.mxu0 %vm1399_vm7, %v2387_v11 }
 0xabb   : > { %v2381_v62 = vpop.xlane.xlu0 %2380 }
 0xabc   : > { %5181 = vrcp.f32 %v2381_v62 }
 0xac2   : > { %v4718_v40 = vpop.f32.mrb[20].mxu1 }
 0xac3   : > { %v2468_v41 = vpop.f32.mrb[21].mxu1 }
 0xac4   : > { %v2564_v42 = vpack.c.bf16 %v4718_v40, %v2468_v41  ;;  %v5045_v41 = vld [vmem:[%s5866_s14 + $0x30] sm:$0xff]  }
 0xac6   : > { %v5182_v36 = vpop.eup %5181 }
 0xac7   : > { %v2389_v1 = vmul.f32 %v5182_v36, %v5178_v37 }
 0xac9   : > { %4724 = vmatmul.mubr.msk.f32.vlgmr.msra.gmra.mrb[16].mxu0 %vm1399_vm7, %v2389_v1 }
 0xaca   : > { %4730 = vmatprep.mubr.msk.bf16.mxu0 %vm1216_vm4, %v2564_v42  ;;  %4727 = vmatpush3.bf16.msra.mxu0 %v5043_v61 }
 0xacb   : > { %4728 = vmatprep.subr.bf16.mxu0 %v5044_v63 }
 0xacd   : > { %v4740_v43 = vpop.f32.mrb[22].mxu1 }
 0xace   : > { %v2820_v44 = vmul.f32 0.17677669, %v4740_v43  ;;  %v2719_v21 = vpop.f32.mrb[23].mxu1  ;;  %4729 = vmatpush3.bf16.msra.mxu0 %v5044_v63  ;;  %v5240_v63 = vld [vmem:[#allocation2 + $0x10] sm:$0xff] }
 0xacf   : > { %v2819_v47 = vmul.f32 0.17677669, %v2719_v21 }
 0xad0   : > { %v2824_v53 = vadd.f32 %v2820_v44, %v5763_v25 }
 0xad1   : > { %v2823_v49 = vadd.f32 %v2819_v47, %v5763_v25  ;;  %v5046_v47 = vld [vmem:[%s5866_s14 + $0x38] sm:$0xff]  }
 0xad2   : > { %v2830_v9 = vsel %vm1399_vm7, %v2824_v53, -inf }
 0xad3   : > { %2831 = vmax.xlane.f32.xlu0 %v2830_v9  ;;  %v2827_v54 = vsel %vm1399_vm7, %v2823_v49, -inf }
 0xad5   : > { %v4747_v51 = vpop.f32.mrb[24].mxu1 }
 0xad6   : > { %v2810_v52 = vpop.f32.mrb[25].mxu1  ;;  %v2822_v55 = vmul.f32 0.17677669, %v4747_v51 }
 0xad7   : > { %v2821_v56 = vmul.f32 0.17677669, %v2810_v52  ;;  %2828 = vmax.xlane.f32.xlu0 %v2827_v54 }
 0xad8   : > { %v2826_v59 = vadd.f32 %v2822_v55, %v5763_v25 }
 0xad9   : > { %v2825_v57 = vadd.f32 %v2821_v56, %v5763_v25  ;;  %v4364_v56 = vld [vmem:[%s3122_s13] ss:$0 sm:$0xff] }
 0xada   : > { %v2836_v60 = vsel %vm1399_vm7, %v2826_v59, -inf }
 0xadb   : > { %v2833_v58 = vsel %vm1399_vm7, %v2825_v57, -inf }
 0xadc   : > { %2834 = vmax.xlane.f32.xlu0 %v2833_v58  ;;  %v5239_v58 = vld [vmem:[#allocation2] sm:$0xff] }
 0xae0   : > { %2837 = vmax.xlane.f32.xlu0 %v2836_v60 }
 0xb60   : > { %v2832_v0 = vpop.xlane.xlu0 %2831 }
 0xb61   : > { %v2840_v2 = vsub.f32 %v2824_v53, %v2832_v0 }
 0xb63   : > { %v2845_v3 = vmul.f32 1.442695, %v2840_v2 }
 0xb64   : > { %v2829_v19 = vpop.xlane.xlu0 %2828 }
 0xb65   : > { %5183 = vpow2.f32 %v2845_v3  ;;  %v2839_v4 = vsub.f32 %v2823_v49, %v2829_v19  ;;  %v5241_v3 = vld [vmem:[#allocation2 + $0x8] sm:$0xff] }
 0xb67   : > { %v2843_v22 = vmul.f32 1.442695, %v2839_v4 }
 0xb69   : > { %5185 = vpow2.f32 %v2843_v22  ;;  %v2835_v5 = vpop.xlane.xlu0 %2834 }
 0xb6a   : > { %v2841_v25 = vsub.f32 %v2825_v57, %v2835_v5  ;;  %v5242_v5 = vld [vmem:[#allocation2 + $0x18] sm:$0xff] }
 0xb6c   : > { %v2847_v13 = vmul.f32 1.442695, %v2841_v25 }
 0xb6d   : > { %v2838_v7 = vpop.xlane.xlu0 %2837 }
 0xb6e   : > { %v2842_v8 = vsub.f32 %v2826_v59, %v2838_v7 }
 0xb6f   : > { %v5184_v10 = vpop.eup %5183 }
 0xb70   : > { %v2849_v14 = vmul.f32 1.442695, %v2842_v8  ;;  %v2854_v16 = vsel %vm1399_vm7, %v5184_v10, 0.0  ;;  %v5047_v8 = vld [vmem:[%s5973_s23] ss:$16 sps:$4 sm:$0xff]  }
 0xb71   : > { %2855 = vadd.xlane.f32.xlu0 %v2854_v16  ;;  %v5053_v16 = vld [vmem:[%s5973_s23 + $0x20] ss:$16 sps:$4 sm:$0xff]  }
 0xb72   : > { %5187 = vpow2.f32 %v2849_v14  ;;  %v5052_v14 = vld [vmem:[%s5973_s23 + $0xc] ss:$16 sps:$4 sm:$0xff]  }
 0xb73   : > { %v5186_v17 = vpop.eup %5185  ;;  %5189 = vpow2.f32 %v2847_v13  ;;  %v5050_v13 = vld [vmem:[%s5973_s23 + $0x8] ss:$16 sps:$4 sm:$0xff]  }
 0xb74   : > { %v2851_v18 = vsel %vm1399_vm7, %v5186_v17, 0.0 }
 0xb75   : > { %2852 = vadd.xlane.f32.xlu1 %v2851_v18  ;;  %v5056_v18 = vld [vmem:[%s5973_s23 + $0x28] ss:$16 sps:$4 sm:$0xff]  }
 0xb7c   : > { %v5188_v20 = vpop.eup %5187 }
 0xb7d   : > { %v2860_v23 = vsel %vm1399_vm7, %v5188_v20, 0.0  ;;  %v5190_v24 = vpop.eup %5189 }
 0xb7e   : > { %2861 = vadd.xlane.f32.xlu0 %v2860_v23  ;;  %v2857_v26 = vsel %vm1399_vm7, %v5190_v24, 0.0 }
 0xb82   : > { %2858 = vadd.xlane.f32.xlu0 %v2857_v26 }
 0xb86   : > { %5003 = vrot.lane.b32.xlu1 %v5742_v12, %s5390_s30 }
 0xb98   : > { %4998 = vrot.lane.b32.xlu0 %v5744_v15, %s5390_s30 }
 0xb9c   : > { %v4725_v27 = vpop.f32.mrb[16].mxu0 }
 0xb9d   : > { %v2555_v28 = vpop.f32.mrb[17].mxu0 }
 0xb9e   : > { %v2565_v29 = vpack.c.bf16 %v4725_v27, %v2555_v28 }
 0xba0   : > { %4731 = vmatmul.mubr.msk.bf16.vlgmr.msra.gmra.mrb[12].mxu0 %vm1216_vm4, %v2565_v29 }
 0xbfe   : > { %v2856_v32 = vpop.xlane.xlu0 %2855 }
 0xc02   : > { %v2853_v30 = vpop.xlane.xlu1 %2852 }
 0xc03   : > { %5191 = vrcp.f32 %v2853_v30 }
 0xc04   : > { %5193 = vrcp.f32 %v2856_v32 }
 0xc06   : > { %v5004_v31 = vpop.permute.xlu1 %5003 }
 0xc07   : > { %v5006_v33 = vunpack.i.h.bf16 %v5004_v31  ;;  %v5005_v34 = vunpack.i.l.bf16 %v5004_v31 }
 0xc09   : > { %v4846_v35 = vpack.c.bf16 %v5006_v33, %v5005_v34 }
 0xc0b   : > { %v2862_v37 = vpop.xlane.xlu0 %2861  ;;  %4847 = vmatprep.subr.bf16.mxu1 %v4846_v35 }
 0xc0c   : > { %4849 = vmatpush3.bf16.msra.mxu1 %v4846_v35  ;;  %5195 = vrcp.f32 %v2862_v37 }
 0xc0d   : > { %v5192_v12 = vpop.eup %5191 }
 0xc0e   : > { %v2864_v38 = vmul.f32 %v5192_v12, %v5186_v17  ;;  %v5194_v42 = vpop.eup %5193  ;;  %v5055_v17 = vld [vmem:[%s5973_s23 + $0x24] ss:$16 sps:$4 sm:$0xff]  }
 0xc0f   : > { %v2859_v15 = vpop.xlane.xlu0 %2858  ;;  %v2866_v43 = vmul.f32 %v5194_v42, %v5184_v10  ;;  %v5049_v10 = vld [vmem:[%s5973_s23 + $0x4] ss:$16 sps:$4 sm:$0xff]   ;;  %v5070_v42 = vld [vmem:[%s5973_s23 + $0x6c] ss:$16 sps:$4 sm:$0xff]  }
 0xc10   : > { %5197 = vrcp.f32 %v2859_v15  ;;  %4752 = vmatprep.mubr.msk.f32.mxu0 %vm1399_vm7, %v2864_v38  ;;  %3423 = vmatprep.subr.bf16.mxu1 %v5049_v10 }
 0xc13   : > { %v4999_v39 = vpop.permute.xlu0 %4998 }
 0xc14   : > { %v5001_v11 = vunpack.i.h.bf16 %v4999_v39  ;;  %v5000_v62 = vunpack.i.l.bf16 %v4999_v39  ;;  %v5061_v39 = vld [vmem:[%s5973_s23 + $0x44] ss:$16 sps:$4 sm:$0xff]  }
 0xc16   : > { %v4842_v40 = vpack.c.bf16 %v5001_v11, %v5000_v62  ;;  %v5196_v36 = vpop.eup %5195  ;;  %v5064_v11 = vld [vmem:[%s5973_s23 + $0x4c] ss:$16 sps:$4 sm:$0xff]   ;;  %v5059_v62 = vld [vmem:[%s5973_s23 + $0x40] ss:$16 sps:$4 sm:$0xff]  }
 0xc17   : > { %v2870_v21 = vmul.f32 %v5196_v36, %v5188_v20  ;;  %v5058_v20 = vld [vmem:[%s5973_s23 + $0x2c] ss:$16 sps:$4 sm:$0xff]   ;;  %v5065_v36 = vld [vmem:[%s5973_s23 + $0x60] ss:$16 sps:$4 sm:$0xff]  }
 0xc18   : > { %4843 = vmatprep.subr.bf16.mxu0 %v4842_v40 }
 0xc19   : > { %4845 = vmatpush3.bf16.msra.mxu0 %v4842_v40  ;;  %v5062_v40 = vld [vmem:[%s5973_s23 + $0x48] ss:$16 sps:$4 sm:$0xff]  }
 0xc1a   : > { %v5198_v1 = vpop.eup %5197  ;;  %4762 = vmatprep.subr.bf16.mxu0 %v5045_v41 }
 0xc1b   : > { %v2868_v44 = vmul.f32 %v5198_v1, %v5190_v24  ;;  %v5068_v1 = vld [vmem:[%s5973_s23 + $0x68] ss:$16 sps:$4 sm:$0xff]  }
 0xc1c   : > { %4753 = vmatmul.mubr.msk.f32.vlgmr.msra.gmra.mrb[18].mxu0 %vm1399_vm7, %v2866_v43  ;;  %v5073_v43 = vld [vmem:[%s5973_s23 + $0x84] ss:$16 sps:$4 sm:$0xff]  }
 0xc1d   : > { %4759 = vmatprep.mubr.msk.f32.mxu1 %vm1399_vm7, %v2868_v44  ;;  %4763 = vmatpush3.bf16.msra.mxu0 %v5045_v41  ;;  %v5067_v41 = vld [vmem:[%s5973_s23 + $0x64] ss:$16 sps:$4 sm:$0xff]   ;;  %v5076_v44 = vld [vmem:[%s5973_s23 + $0x8c] ss:$16 sps:$4 sm:$0xff]  }
 0xc1e   : > { %4760 = vmatmul.mubr.msk.f32.vlgmr.msra.gmra.mrb[26].mxu1 %vm1399_vm7, %v2870_v21  ;;  %4764 = vmatprep.subr.bf16.mxu0 %v5046_v47  ;;  %v5071_v21 = vld [vmem:[%s5973_s23 + $0x80] ss:$16 sps:$4 sm:$0xff]  }
 0xc1f   : > { %3455 = vmatprep.mubr.bf16.mxu1 %v5386_v6  ;;  %3424 = vmatpush1.bf16.msra.mxu1 %v5047_v8 }
 0xc20   : > { %3425 = vmatprep.subr.bf16.mxu1 %v5055_v17 }
 0xc21   : > { %4765 = vmatpush3.bf16.msra.mxu0 %v5046_v47  ;;  %v5074_v47 = vld [vmem:[%s5973_s23 + $0x88] ss:$16 sps:$4 sm:$0xff]  }
 0xc22   : > { %3476 = vmatprep.subr.bf16.mxu0 %v5052_v14 }
 0xc23   : > { %3426 = vmatpush1.bf16.msra.mxu1 %v5053_v16 }
 0xc24   : > { %3427 = vmatprep.subr.bf16.mxu1 %v5061_v39  ;;  %v5098_v39 = vld [vmem:[%s5983_s7 + $0x80] sm:$0xff]  }
 0xc27   : > { %3428 = vmatpush1.bf16.msra.mxu1 %v5059_v62  ;;  %v5099_v62 = vld [vmem:[%s5983_s7 + $0x48] sm:$0xff]  }
 0xc28   : > { %3429 = vmatprep.subr.bf16.mxu1 %v5067_v41 }
 0xc2b   : > { %3430 = vmatpush1.bf16.msra.mxu1 %v5065_v36  ;;  %v5102_v36 = vld [vmem:[%s5983_s7 + $0x88] sm:$0xff]  }
 0xc2c   : > { %3431 = vmatprep.subr.bf16.mxu1 %v5073_v43 }
 0xc2f   : > { %3432 = vmatpush1.bf16.msra.mxu1 %v5071_v21  ;;  %v5105_v21 = vld [vmem:[%s5983_s7 + $0x10] sm:$0xff]  }
 0xcef   : > { %v4754_v53 = vpop.f32.mrb[18].mxu0 }
 0xcf0   : > { %v2949_v9 = vpop.f32.mrb[19].mxu0 }
 0xcf1   : > { %v3045_v49 = vpack.c.bf16 %v4754_v53, %v2949_v9  ;;  %v4761_v51 = vpop.f32.mrb[26].mxu1  ;;  %v5079_v53 = vld [vmem:[%s5973_s23 + $0xa4] ss:$16 sps:$4 sm:$0xff]   ;;  %v5082_v9 = vld [vmem:[%s5973_s23 + $0xac] ss:$16 sps:$4 sm:$0xff]  }
 0xcf2   : > { %v3036_v52 = vpop.f32.mrb[27].mxu1  ;;  %3433 = vmatprep.subr.bf16.mxu1 %v5079_v53  ;;  %v5107_v53 = vld [vmem:[%s5983_s7 + $0x58] sm:$0xff]  }
 0xcf3   : > { %v3046_v54 = vpack.c.bf16 %v4761_v51, %v3036_v52  ;;  %4766 = vmatprep.mubr.msk.bf16.mxu0 %vm1216_vm4, %v3045_v49  ;;  %v5077_v49 = vld [vmem:[%s5973_s23 + $0xa0] ss:$16 sps:$4 sm:$0xff]   ;;  %v5080_v51 = vld [vmem:[%s5973_s23 + $0xa8] ss:$16 sps:$4 sm:$0xff]   ;;  %v5085_v52 = vld [vmem:[%s5973_s23 + $0xc4] ss:$16 sps:$4 sm:$0xff]  }
 0xcf4   : > { %3434 = vmatpush1.bf16.msra.mxu1 %v5077_v49  ;;  %v5109_v49 = vld [vmem:[%s5983_s7 + $0x18] sm:$0xff]  }
 0xcf5   : > { %4767 = vmatmul.mubr.msk.bf16.vlgmr.msra.gmra.mrb[12].mxu0 %vm1216_vm4, %v3046_v54  ;;  %v5088_v54 = vld [vmem:[%s5973_s23 + $0xcc] ss:$16 sps:$4 sm:$0xff]   ;;  %3435 = vmatprep.subr.bf16.mxu1 %v5085_v52  ;;  %v5111_v52 = vld [vmem:[%s5983_s7 + $0x60] sm:$0xff]  }
 0xcf6   : > { %3508 = vmatprep.mubr.bf16.mxu0 %v5386_v6  ;;  %3477 = vmatpush1.bf16.msra.mxu0 %v5050_v13 }
 0xcf7   : > { %3478 = vmatprep.subr.bf16.mxu0 %v5058_v20 }
 0xcfa   : > { %3479 = vmatpush1.bf16.msra.mxu0 %v5056_v18 }
 0xcfb   : > { %3480 = vmatprep.subr.bf16.mxu0 %v5064_v11 }
 0xcfe   : > { %3481 = vmatpush1.bf16.msra.mxu0 %v5062_v40  ;;  %v5100_v40 = vld [vmem:[%s5983_s7 + $0xc8] sm:$0xff]  }
 0xcff   : > { %3482 = vmatprep.subr.bf16.mxu0 %v5070_v42  ;;  %v5101_v42 = vld [vmem:[%s5983_s7 + $0x8] sm:$0xff]  }
 0xd02   : > { %3483 = vmatpush1.bf16.msra.mxu0 %v5068_v1 }
 0xd03   : > { %3484 = vmatprep.subr.bf16.mxu0 %v5076_v44  ;;  %v5104_v44 = vld [vmem:[%s5983_s7 + $0xd0] sm:$0xff]  }
 0xd06   : > { %3485 = vmatpush1.bf16.msra.mxu0 %v5074_v47  ;;  %v5106_v47 = vld [vmem:[%s5983_s7 + $0x90] sm:$0xff]  }
 0xd07   : > { %3486 = vmatprep.subr.bf16.mxu0 %v5082_v9  ;;  %v5108_v9 = vld [vmem:[%s5983_s7 + $0xd8] sm:$0xff]  }
 0xd0a   : > { %3487 = vmatpush1.bf16.msra.mxu0 %v5080_v51  ;;  %v5110_v51 = vld [vmem:[%s5983_s7 + $0x98] sm:$0xff]  }
 0xd0b   : > { %3488 = vmatprep.subr.bf16.mxu0 %v5088_v54  ;;  %v5112_v54 = vld [vmem:[%s5983_s7 + $0xe0] sm:$0xff]  }
 0xdc8   : > { %v4768_v55 = vpop.f32.mrb[12].mxu0 }
 0xdc9   : > { %v3099_v57 = vpop.f32.mrb[13].mxu0  ;;  %v3120_v0 = vadd.f32 %v5240_v63, %v4768_v55  ;;  %v5083_v55 = vld [vmem:[%s5973_s23 + $0xc0] ss:$16 sps:$4 sm:$0xff]  }
 0xdca   : > { %v3118_v59 = vadd.f32 %v5239_v58, %v3099_v57  ;;  %v4769_v60 = vpop.f32.mrb[14].mxu0  ;;  %v5091_v57 = vld [vmem:[%s5973_s23 + $0xe4] ss:$16 sps:$4 sm:$0xff]   ;;  %v5094_v58 = vld [vmem:[%s5973_s23 + $0xec] ss:$16 sps:$4 sm:$0xff]   ;;  %3436 = vmatpush1.bf16.msra.mxu1 %v5083_v55 }
 0xdcb   : > { %v3102_v61 = vpop.f32.mrb[15].mxu0  ;;  %v5965_v22 = vadd.f32 %v4364_v56, %v3120_v0  ;;  %v3121_v25 = vadd.f32 %v5242_v5, %v4769_v60  ;;  %v5092_v60 = vld [vmem:[%s5973_s23 + $0xe8] ss:$16 sps:$4 sm:$0xff]   ;;  %3437 = vmatprep.subr.bf16.mxu1 %v5091_v57  ;;  %v5096_v63 = vld [vmem:[%s5983_s7 + $0xc0] sm:$0xff]  }
 0xdcc   : > { %v5960_v2 = vadd.f32 %v4364_v56, %v3118_v59  ;;  %v3119_v19 = vadd.f32 %v5241_v3, %v3102_v61  ;;  %v5089_v59 = vld [vmem:[%s5973_s23 + $0xe0] ss:$16 sps:$4 sm:$0xff]   ;;  %v5115_v57 = vld [vmem:[%s5983_s7 + $0x68] sm:$0xff]  }
 0xdcd   : > { %v5969_v7 = vadd.f32 %v4364_v56, %v3121_v25  ;;  %v5095_v61 = vld [vmem:[%s5983_s7 + $0x40] sm:$0xff]  }
 0xdce   : > { %v5962_v4 = vadd.f32 %v4364_v56, %v3119_v19  ;;  %3138 = vadd.xlane.f32.xlu0 %v5960_v2  ;;  %v5086_v56 = vld [vmem:[%s5973_s23 + $0xc8] ss:$16 sps:$4 sm:$0xff]   ;;  %3438 = vmatpush1.bf16.msra.mxu1 %v5089_v59  ;;  %v5113_v55 = vld [vmem:[%s5983_s7 + $0x20] sm:$0xff]   ;;  %s3977_s23 = scalar_lea.vmem %s6222_s10, %s5611_s22 }
 0xdcf   : > { %3489 = vmatpush1.bf16.msra.mxu0 %v5086_v56  ;;  %4542 = vmatprep.subr.bf16.mxu1 %v5095_v61  ;;  %v5114_v56 = vld [vmem:[%s5983_s7 + $0xa0] sm:$0xff]   ;;  %v5117_v59 = vld [vmem:[%s5983_s7 + $0x28] sm:$0xff]   ;;  %v5119_v61 = vld [vmem:[%s5983_s7 + $0x70] sm:$0xff]  }
 0xdd0   : > { %3140 = vadd.xlane.f32.xlu1 %v5962_v4  ;;  %3490 = vmatprep.subr.bf16.mxu0 %v5094_v58  ;;  %v5116_v58 = vld [vmem:[%s5983_s7 + $0xe8] sm:$0xff]  }
 0xdd2   : > { %3142 = vadd.xlane.f32.xlu0 %v5965_v22 }
 0xdd3   : > { %3491 = vmatpush1.bf16.msra.mxu0 %v5092_v60  ;;  %v5118_v60 = vld [vmem:[%s5983_s7 + $0xa8] sm:$0xff]  }
 0xdd4   : > { %4570 = vmatprep.subr.bf16.mxu0 %v5096_v63  ;;  %v5120_v63 = vld [vmem:[%s5983_s7 + $0xf0] sm:$0xff]  }
 0xdd6   : > { %3144 = vadd.xlane.f32.xlu0 %v5969_v7 }
 0xe5b   : > { %v3139_v23 = vpop.xlane.xlu0 %3138 }
 0xe5c   : > { %v3146_v24 = vmul.f32 0.0078125, %v3139_v23 }
 0xe5d   : > { %v3141_v26 = vpop.xlane.xlu1 %3140 }
 0xe5e   : > { %v5986_v27 = vsub.f32 %v5960_v2, %v3146_v24  ;;  %v3147_v28 = vmul.f32 0.0078125, %v3141_v26  ;;  %v4365_v24 = vld [vmem:[%s3134_s2] ss:$0 sm:$0xff] }
 0xe5f   : > { %v3143_v29 = vpop.xlane.xlu0 %3142 }
 0xe60   : > { %v5989_v30 = vsub.f32 %v5962_v4, %v3147_v28  ;;  %v3148_v31 = vmul.f32 0.0078125, %v3143_v29  ;;  %v3154_v32 = vmul.f32 %v5986_v27, %v5986_v27 }
 0xe62   : > { %3158 = vadd.xlane.f32.xlu0 %v3154_v32  ;;  %v5994_v34 = vsub.f32 %v5965_v22, %v3148_v31  ;;  %v3155_v37 = vmul.f32 %v5989_v30, %v5989_v30  ;;  %v4366_v31 = vld [vmem:[%s3136_s1] ss:$0 sm:$0xff] }
 0xe63   : > { %v3145_v33 = vpop.xlane.xlu0 %3144 }
 0xe64   : > { %v3149_v35 = vmul.f32 0.0078125, %v3145_v33  ;;  %v3156_v38 = vmul.f32 %v5994_v34, %v5994_v34 }
 0xe66   : > { %3160 = vadd.xlane.f32.xlu0 %v3155_v37  ;;  %v5999_v12 = vsub.f32 %v5969_v7, %v3149_v35 }
 0xe68   : > { %v3157_v15 = vmul.f32 %v5999_v12, %v5999_v12 }
 0xe6a   : > { %3162 = vadd.xlane.f32.xlu0 %v3156_v38 }
 0xe6e   : > { %3164 = vadd.xlane.f32.xlu0 %v3157_v15  ;;  %v5097_v15 = vld [vmem:[%s5983_s7] sm:$0xff]  }
 0xeef   : > { %v3159_v0 = vpop.xlane.xlu0 %3158 }
 0xef0   : > { %v3166_v3 = vmul.f32 0.0078125, %v3159_v0  ;;  %v5121_v0 = vld [vmem:[%s5983_s7 + $0x30] sm:$0xff]  }
 0xef2   : > { %v3170_v19 = vadd.f32 1e-05, %v3166_v3  ;;  %v5122_v3 = vld [vmem:[%s5983_s7 + $0xb0] sm:$0xff]  }
 0xef3   : > { %v3161_v5 = vpop.xlane.xlu0 %3160 }
 0xef4   : > { %5199 = vrsqrt.f32 %v3170_v19  ;;  %v3167_v25 = vmul.f32 0.0078125, %v3161_v5  ;;  %v5123_v19 = vld [vmem:[%s5983_s7 + $0x78] sm:$0xff]  }
 0xef5   : > { %v5124_v5 = vld [vmem:[%s5983_s7 + $0xf8] sm:$0xff]  }
 0xef6   : > { %v3171_v8 = vadd.f32 1e-05, %v3167_v25  ;;  %v5125_v25 = vld [vmem:[%s5983_s7 + $0x38] sm:$0xff]  }
 0xef7   : > { %v3163_v10 = vpop.xlane.xlu0 %3162 }
 0xef8   : > { %5201 = vrsqrt.f32 %v3171_v8  ;;  %v3168_v13 = vmul.f32 0.0078125, %v3163_v10  ;;  %v5126_v8 = vld [vmem:[%s5983_s7 + $0xb8] sm:$0xff]   ;;  %v3241_v10 = vld [vmem:[%s3240_s11] sm:$0xf] }
 0xefa   : > { %v3172_v14 = vadd.f32 1e-05, %v3168_v13  ;;  %v3257_v13 = vsub.s32 3, %v5708_v45 }
 0xefb   : > { %v3165_v16 = vpop.xlane.xlu0 %3164 }
 0xefc   : > { %5203 = vrsqrt.f32 %v3172_v14  ;;  %v3169_v17 = vmul.f32 0.0078125, %v3165_v16  ;;  %v3246_v14 = vrot.slane %v3241_v10, %v950_v46  ;;  %v3254_v16 = vrot.slane %v3241_v10, %v958_v50 }
 0xefe   : > { %v5200_v18 = vpop.eup %5199  ;;  %v3173_v20 = vadd.f32 1e-05, %v3169_v17  ;;  %v3250_v17 = vrot.slane %v3241_v10, %v954_v48 }
 0xeff   : > { %v3178_v23 = vmul.f32 %v5200_v18, %v5986_v27  ;;  %v3258_v18 = vrot.slane %v3241_v10, %v3257_v13 }
 0xf00   : > { %5205 = vrsqrt.f32 %v3173_v20 }
 0xf01   : > { %v3188_v29 = vmul.f32 %v4365_v24, %v3178_v23 }
 0xf02   : > { %v5202_v26 = vpop.eup %5201 }
 0xf03   : > { %v3179_v28 = vmul.f32 %v5202_v26, %v5989_v30  ;;  %v3198_v35 = vadd.f32 %v4366_v31, %v3188_v29 }
 0xf05   : > { %v3189_v32 = vmul.f32 %v4365_v24, %v3179_v28 }
 0xf06   : > { %v5204_v33 = vpop.eup %5203 }
 0xf07   : > { %v3199_v37 = vadd.f32 %v4366_v31, %v3189_v32  ;;  %v3180_v38 = vmul.f32 %v5204_v33, %v5994_v34 }
 0xf09   : > { %v3202_v27 = vpack.c.bf16 %v3199_v37, %v3198_v35  ;;  %v3190_v41 = vmul.f32 %v4365_v24, %v3180_v38 }
 0xf0a   : > { %v5206_v11 = vpop.eup %5205 }
 0xf0b   : > { %3456 = vmatmul.mubr.bf16.vlgmr.msra.gmra.mrb[28].mxu1 %v3202_v27  ;;  %3509 = vmatmul.mubr.bf16.vlgmr.msra.gmra.mrb[20].mxu0 %v3202_v27  ;;  %v3181_v30 = vmul.f32 %v5206_v11, %v5999_v12  ;;  %v3200_v1 = vadd.f32 %v4366_v31, %v3190_v41 }
 0xf0c   : > { %3465 = vmatprep.mubr.bf16.mxu1 %v5386_v6  ;;  %3518 = vmatprep.mubr.bf16.mxu0 %v5386_v6  ;;  %v5103_v6 = vld [vmem:[%s5983_s7 + $0x50] sm:$0xff]  }
 0xf0d   : > { %v3191_v34 = vmul.f32 %v4365_v24, %v3181_v30  ;;  %4543 = vmatpush3.bf16.msra.mxu1 %v5097_v15  ;;  %4571 = vmatpush3.bf16.msra.mxu0 %v5098_v39 }
 0xf0e   : > { %4544 = vmatprep.subr.bf16.mxu1 %v5099_v62  ;;  %4572 = vmatprep.subr.bf16.mxu0 %v5100_v40 }
 0xf0f   : > { %v3201_v12 = vadd.f32 %v4366_v31, %v3191_v34 }
 0xf11   : > { %v3203_v43 = vpack.c.bf16 %v3201_v12, %v3200_v1  ;;  %4545 = vmatpush3.bf16.msra.mxu1 %v5101_v42  ;;  %4573 = vmatpush3.bf16.msra.mxu0 %v5102_v36 }
 0xf12   : > { %4546 = vmatprep.subr.bf16.mxu1 %v5103_v6  ;;  %4574 = vmatprep.subr.bf16.mxu0 %v5104_v44 }
 0xf13   : > { %3466 = vmatmul.mubr.bf16.gmra.mrb[32].mxu1 %v3203_v43  ;;  %3519 = vmatmul.mubr.bf16.gmra.mrb[24].mxu0 %v3203_v43 }
 0xf15   : > { %4547 = vmatpush3.bf16.msra.mxu1 %v5105_v21  ;;  %4575 = vmatpush3.bf16.msra.mxu0 %v5106_v47 }
 0xf16   : > { %4548 = vmatprep.subr.bf16.mxu1 %v5107_v53  ;;  %4576 = vmatprep.subr.bf16.mxu0 %v5108_v9 }
 0xf19   : > { %4549 = vmatpush3.bf16.msra.mxu1 %v5109_v49  ;;  %4577 = vmatpush3.bf16.msra.mxu0 %v5110_v51 }
 0xf1a   : > { %4550 = vmatprep.subr.bf16.mxu1 %v5111_v52  ;;  %4578 = vmatprep.subr.bf16.mxu0 %v5112_v54 }
 0xf1d   : > { %4551 = vmatpush3.bf16.msra.mxu1 %v5113_v55  ;;  %4579 = vmatpush3.bf16.msra.mxu0 %v5114_v56 }
 0xf1e   : > { %4552 = vmatprep.subr.bf16.mxu1 %v5115_v57  ;;  %4580 = vmatprep.subr.bf16.mxu0 %v5116_v58 }
 0xf21   : > { %4553 = vmatpush3.bf16.msra.mxu1 %v5117_v59  ;;  %4581 = vmatpush3.bf16.msra.mxu0 %v5118_v60 }
 0xf22   : > { %4554 = vmatprep.subr.bf16.mxu1 %v5119_v61  ;;  %4582 = vmatprep.subr.bf16.mxu0 %v5120_v63 }
 0xf25   : > { %4555 = vmatpush3.bf16.msra.mxu1 %v5121_v0  ;;  %4583 = vmatpush3.bf16.msra.mxu0 %v5122_v3 }
 0xf26   : > { %4556 = vmatprep.subr.bf16.mxu1 %v5123_v19  ;;  %4584 = vmatprep.subr.bf16.mxu0 %v5124_v5 }
 0xf29   : > { %4557 = vmatpush3.bf16.msra.mxu1 %v5125_v25  ;;  %4585 = vmatpush3.bf16.msra.mxu0 %v5126_v8 }
 0xfde   : > { %v3457_v20 = vpop.f32.mrb[28].mxu1  ;;  %v3510_v23 = vpop.f32.mrb[20].mxu0 }
 0xfdf   : > { %v3458_v24 = vadd.f32 %v3457_v20, %v3246_v14  ;;  %v3511_v26 = vadd.f32 %v3510_v23, %v3254_v16  ;;  %v3459_v28 = vpop.f32.mrb[29].mxu1  ;;  %v3512_v29 = vpop.f32.mrb[21].mxu0 }
 0xfe0   : > { %v3460_v31 = vadd.f32 %v3459_v28, %v3250_v17  ;;  %v3513_v32 = vadd.f32 %v3512_v29, %v3258_v18  ;;  %v3461_v33 = vpop.f32.mrb[30].mxu1  ;;  %v3514_v35 = vpop.f32.mrb[22].mxu0 }
 0xfe1   : > { %v3545_v37 = vmul.f32 0.70710677, %v3458_v24  ;;  %v3547_v38 = vmul.f32 0.70710677, %v3511_v26  ;;  %v3462_v50 = vadd.f32 %v3461_v33, %v3246_v14  ;;  %v6086_v15 = vadd.f32 %v3514_v35, %v3254_v16  ;;  %v3463_v45 = vpop.f32.mrb[31].mxu1  ;;  %v3516_v48 = vpop.f32.mrb[23].mxu0 }
 0xfe2   : > { %v3546_v46 = vmul.f32 0.70710677, %v3460_v31  ;;  %v3548_v27 = vmul.f32 0.70710677, %v3513_v32  ;;  %v3464_v39 = vadd.f32 %v3463_v45, %v3250_v17  ;;  %v6088_v11 = vadd.f32 %v3516_v48, %v3258_v18 }
 0xfe3   : > { %5207 = verf.f32 %v3545_v37  ;;  %v3549_v62 = vmul.f32 0.70710677, %v3462_v50  ;;  %v3551_v40 = vmul.f32 0.70710677, %v6086_v15  ;;  %v3529_v0 = vmul.f32 0.5, %v3458_v24 }
 0xfe4   : > { %5209 = verf.f32 %v3547_v38  ;;  %v3550_v30 = vmul.f32 0.70710677, %v3464_v39  ;;  %v3552_v34 = vmul.f32 0.70710677, %v6088_v11  ;;  %v3531_v3 = vmul.f32 0.5, %v3511_v26 }
 0xfe5   : > { %5211 = verf.f32 %v3546_v46  ;;  %v3530_v8 = vmul.f32 0.5, %v3460_v31  ;;  %v3535_v29 = vmul.f32 0.5, %v6086_v15  ;;  %v3534_v31 = vmul.f32 0.5, %v3464_v39 }
 0xfe6   : > { %5213 = verf.f32 %v3548_v27  ;;  %v3467_v41 = vpop.f32.mrb[32].mxu1  ;;  %v3520_v36 = vpop.f32.mrb[24].mxu0 }
 0xfe7   : > { %5215 = verf.f32 %v3549_v62  ;;  %v6092_v42 = vadd.f32 %v3467_v41, %v3246_v14  ;;  %v3469_v1 = vpop.f32.mrb[33].mxu1  ;;  %v6094_v12 = vadd.f32 %v3520_v36, %v3254_v16  ;;  %v3522_v6 = vpop.f32.mrb[25].mxu0 }
 0xfe8   : > { %5217 = verf.f32 %v3551_v40  ;;  %v6096_v43 = vadd.f32 %v3469_v1, %v3250_v17  ;;  %v3471_v44 = vpop.f32.mrb[34].mxu1  ;;  %v6099_v47 = vadd.f32 %v3522_v6, %v3258_v18  ;;  %v3524_v53 = vpop.f32.mrb[26].mxu0 }
 0xfe9   : > { %5219 = verf.f32 %v3550_v30  ;;  %v3553_v21 = vmul.f32 0.70710677, %v6092_v42  ;;  %v3473_v9 = vpop.f32.mrb[35].mxu1  ;;  %v3555_v49 = vmul.f32 0.70710677, %v6094_v12  ;;  %v3526_v51 = vpop.f32.mrb[27].mxu0  ;;  %v3472_v55 = vadd.f32 %v3471_v44, %v3246_v14 }
 0xfea   : > { %5221 = verf.f32 %v3552_v34  ;;  %v3554_v52 = vmul.f32 0.70710677, %v6096_v43  ;;  %v3556_v54 = vmul.f32 0.70710677, %v6099_v47  ;;  %v6104_v56 = vadd.f32 %v3524_v53, %v3254_v16 }
 0xfeb   : > { %5223 = verf.f32 %v3553_v21  ;;  %v6106_v57 = vadd.f32 %v3473_v9, %v3250_v17  ;;  %v3557_v60 = vmul.f32 0.70710677, %v3472_v55  ;;  %v6108_v61 = vadd.f32 %v3526_v51, %v3258_v18 }
 0xfec   : > { %5225 = verf.f32 %v3555_v49  ;;  %v3559_v19 = vmul.f32 0.70710677, %v6104_v56  ;;  %v3532_v16 = vmul.f32 0.5, %v3513_v32  ;;  %v3533_v17 = vmul.f32 0.5, %v3462_v50 }
 0xfed   : > { %v5208_v58 = vpop.eup %5207  ;;  %5227 = verf.f32 %v3554_v52  ;;  %v3558_v10 = vmul.f32 0.70710677, %v6106_v57  ;;  %v3560_v24 = vmul.f32 0.70710677, %v6108_v61  ;;  %v3536_v50 = vmul.f32 0.5, %v6088_v11 }
 0xfee   : > { %v5210_v59 = vpop.eup %5209  ;;  %5229 = verf.f32 %v3556_v54  ;;  %v3577_v25 = vadd.f32 1.0, %v5208_v58  ;;  %v3537_v9 = vmul.f32 0.5, %v6092_v42  ;;  %v3539_v51 = vmul.f32 0.5, %v6094_v12 }
 0xfef   : > { %v5212_v63 = vpop.eup %5211  ;;  %5231 = verf.f32 %v3557_v60  ;;  %v3579_v14 = vadd.f32 1.0, %v5210_v59  ;;  %v3541_v54 = vmul.f32 0.5, %v3472_v55  ;;  %v3538_v60 = vmul.f32 0.5, %v6096_v43 }
 0xff0   : > { %v5214_v5 = vpop.eup %5213  ;;  %5233 = verf.f32 %v3559_v19  ;;  %v3578_v18 = vadd.f32 1.0, %v5212_v63  ;;  %v3593_v37 = vmul.f32 %v3577_v25, %v3529_v0  ;;  %v3543_v63 = vmul.f32 0.5, %v6104_v56 }
 0xff1   : > { %v5216_v13 = vpop.eup %5215  ;;  %5235 = verf.f32 %v3558_v10  ;;  %v3580_v28 = vadd.f32 1.0, %v5214_v5  ;;  %v3595_v32 = vmul.f32 %v3579_v14, %v3531_v3  ;;  %v3542_v3 = vmul.f32 0.5, %v6106_v57 }
 0xff2   : > { %v5218_v20 = vpop.eup %5217  ;;  %v3581_v23 = vadd.f32 1.0, %v5216_v13  ;;  %5237 = verf.f32 %v3560_v24  ;;  %v3594_v62 = vmul.f32 %v3578_v18, %v3530_v8  ;;  %v3540_v55 = vmul.f32 0.5, %v6099_v47 }
 0xff3   : > { %v5220_v26 = vpop.eup %5219  ;;  %v3583_v33 = vadd.f32 1.0, %v5218_v20  ;;  %v3596_v34 = vmul.f32 %v3580_v28, %v3532_v16  ;;  %v3544_v13 = vmul.f32 0.5, %v6108_v61 }
 0xff4   : > { %v5222_v35 = vpop.eup %5221  ;;  %v3597_v38 = vmul.f32 %v3581_v23, %v3533_v17  ;;  %v3582_v46 = vadd.f32 1.0, %v5220_v26 }
 0xff5   : > { %v3599_v27 = vmul.f32 %v3583_v33, %v3535_v29  ;;  %v3584_v45 = vadd.f32 1.0, %v5222_v35  ;;  %v5224_v48 = vpop.eup %5223 }
 0xff6   : > { %v3609_v40 = vpack.c.bf16 %v3597_v38, %v3593_v37  ;;  %v3598_v30 = vmul.f32 %v3582_v46, %v3534_v31  ;;  %v5226_v41 = vpop.eup %5225  ;;  %v3585_v44 = vadd.f32 1.0, %v5224_v48 }
 0xff7   : > { %v3611_v36 = vpack.c.bf16 %v3599_v27, %v3595_v32  ;;  %v3600_v15 = vmul.f32 %v3584_v45, %v3536_v50  ;;  %v5228_v1 = vpop.eup %5227  ;;  %v3587_v49 = vadd.f32 1.0, %v5226_v41  ;;  %v4435_v27 = vld [vmem:[%s3977_s23] ss:$0 sm:$0xff] }
 0xff8   : > { %v3610_v39 = vpack.c.bf16 %v3598_v30, %v3594_v62  ;;  %v5230_v6 = vpop.eup %5229  ;;  %v3586_v52 = vadd.f32 1.0, %v5228_v1  ;;  %v3601_v42 = vmul.f32 %v3585_v44, %v3537_v9 }
 0xff9   : > { %v3612_v21 = vpack.c.bf16 %v3600_v15, %v3596_v34  ;;  %v5232_v53 = vpop.eup %5231  ;;  %v3588_v19 = vadd.f32 1.0, %v5230_v6  ;;  %v3603_v12 = vmul.f32 %v3587_v49, %v3539_v51 }
 0xffa   : > { %3907 = vmatprep.mubr.bf16.mxu1 %v3610_v39  ;;  %v5234_v11 = vpop.eup %5233  ;;  %v3589_v58 = vadd.f32 1.0, %v5232_v53  ;;  %v3602_v14 = vmul.f32 %v3586_v52, %v3538_v60 }
 0xffb   : > { %3956 = vmatprep.mubr.bf16.mxu0 %v3612_v21  ;;  %3908 = vmatmul.mubr.bf16.vlgmr.msra.gmra.mrb[36].mxu1 %v3609_v40  ;;  %v5236_v59 = vpop.eup %5235  ;;  %v3591_v0 = vadd.f32 1.0, %v5234_v11  ;;  %v3604_v20 = vmul.f32 %v3588_v19, %v3540_v55 }
 0xffc   : > { %3957 = vmatmul.mubr.bf16.vlgmr.msra.gmra.mrb[28].mxu0 %v3611_v36  ;;  %v3605_v5 = vmul.f32 %v3589_v58, %v3541_v54  ;;  %v3590_v25 = vadd.f32 1.0, %v5236_v59  ;;  %v5238_v8 = vpop.eup %5237 }
 0xffd   : > { %v3607_v10 = vmul.f32 %v3591_v0, %v3543_v63  ;;  %v3592_v43 = vadd.f32 1.0, %v5238_v8 }
 0xffe   : > { %v3606_v16 = vmul.f32 %v3590_v25, %v3542_v3  ;;  %v3613_v17 = vpack.c.bf16 %v3605_v5, %v3601_v42 }
 0xfff   : > { %v3615_v56 = vpack.c.bf16 %v3607_v10, %v3603_v12  ;;  %v3608_v57 = vmul.f32 %v3592_v43, %v3544_v13 }
0x1000   : > { %v3614_v18 = vpack.c.bf16 %v3606_v16, %v3602_v14  ;;  %v4437_v16 = vld [vmem:[%s704_s26] ss:$0 sm:$0xff] (!%p4436_p9) }
0x1001   : > { %v3616_v23 = vpack.c.bf16 %v3608_v57, %v3604_v20  ;;  %v4438_v20 = vld [vmem:[%s707_s20] ss:$0 sm:$0xff] (!%p4436_p9) }
0x1002   : > { %3915 = vmatprep.mubr.bf16.mxu1 %v3614_v18 }
0x1003   : > { %3916 = vmatmul.mubr.bf16.gmra.mrb[40].mxu1 %v3613_v17  ;;  %3964 = vmatprep.mubr.bf16.mxu0 %v3616_v23 }
0x1004   : > { %3965 = vmatmul.mubr.bf16.gmra.mrb[32].mxu0 %v3615_v56 }
0x10ce   : > { %v4558_v24 = vpop.f32.mrb[36].mxu1 }
0x10cf   : > { %v4586_v26 = vpop.f32.mrb[28].mxu0  ;;  %v4559_v47 = vpop.f32.mrb[37].mxu1 }
0x10d0   : > { %v4560_v28 = vadd.f32 %v4559_v47, %v4558_v24  ;;  %v4587_v29 = vpop.f32.mrb[29].mxu0  ;;  %v4561_v61 = vpop.f32.mrb[38].mxu1 }
0x10d1   : > { %v4588_v33 = vadd.f32 %v4587_v29, %v4586_v26  ;;  %v4589_v31 = vpop.f32.mrb[30].mxu0  ;;  %v4562_v35 = vpop.f32.mrb[39].mxu1 }
0x10d2   : > { %v4563_v37 = vadd.f32 %v4562_v35, %v4561_v61  ;;  %v4590_v38 = vpop.f32.mrb[31].mxu0 }
0x10d3   : > { %v3959_v46 = vadd.f32 %v4588_v33, %v4560_v28  ;;  %v4591_v32 = vadd.f32 %v4590_v38, %v4589_v31 }
0x10d5   : > { %v3973_v50 = vadd.f32 %v3959_v46, %v5960_v2  ;;  %v3962_v45 = vadd.f32 %v4591_v32, %v4563_v37 }
0x10d6   : > { %v4564_v40 = vpop.f32.mrb[40].mxu1 }
0x10d7   : > { %v3985_v48 = vadd.f32 %v4435_v27, %v3973_v50  ;;  %v3974_v62 = vadd.f32 %v3962_v45, %v5962_v4  ;;  %v4565_v30 = vpop.f32.mrb[41].mxu1  ;;  %v4592_v34 = vpop.f32.mrb[32].mxu0 }
0x10d8   : > { %v4566_v36 = vadd.f32 %v4565_v30, %v4564_v40  ;;  %v4567_v15 = vpop.f32.mrb[42].mxu1  ;;  %v4593_v1 = vpop.f32.mrb[33].mxu0 }
0x10d9   : > { %3989 = vst [vmem:[#allocation2] sm:$0xff] %v3985_v48  ;;  %v3986_v41 = vadd.f32 %v4435_v27, %v3974_v62  ;;  %v4568_v39 = vpop.f32.mrb[43].mxu1  ;;  %v4594_v6 = vadd.f32 %v4593_v1, %v4592_v34  ;;  %v4595_v44 = vpop.f32.mrb[34].mxu0 }
0x10da   : > { %v4569_v21 = vadd.f32 %v4568_v39, %v4567_v15  ;;  %v4596_v53 = vpop.f32.mrb[35].mxu0 }
0x10db   : > { %3990 = vst [vmem:[#allocation2 + $0x8] sm:$0xff] %v3986_v41  ;;  %v3967_v9 = vadd.f32 %v4594_v6, %v4566_v36  ;;  %v4597_v2 = vadd.f32 %v4596_v53, %v4595_v44 }
0x10dd   : > { %v3975_v49 = vadd.f32 %v3967_v9, %v5965_v22  ;;  %v3970_v11 = vadd.f32 %v4597_v2, %v4569_v21  ;;  %3996 = sbr.rel (%p4436_p9) target bundleno = 4648 (0x1228), region = 112 }
0x10df   : > { %v3987_v4 = vadd.f32 %v4435_v27, %v3975_v49  ;;  %v3976_v51 = vadd.f32 %v3970_v11, %v5969_v7 }
0x10e1   : > { %3991 = vst [vmem:[#allocation2 + $0x10] sm:$0xff] %v3987_v4  ;;  %v3988_v52 = vadd.f32 %v4435_v27, %v3976_v51  ;;  %v4001_v54 = vrot.slane (!%p4436_p9), %v3987_v4, 7 }
0x10e3   : > { %3992 = vst [vmem:[#allocation2 + $0x18] sm:$0xff] %v3988_v52  ;;  %v4003_v58 = vsel (!%p4436_p9), %vm4002_vm8, %v4001_v54, %v3985_v48 }
0x10e4   : > { %v4006_v59 = vsel %vm4005_vm9, %v4003_v58, 0.0 }
0x10e5   : > { %4007 = vadd.xlane.f32.xlu0 %v4006_v59 }
0x1172   : > { %v4008_v60 = vpop.xlane.xlu0 %4007 }
0x1173   : > { %v4009_v63 = vmul.f32 0.0078125, %v4008_v60 }
0x1175   : > { %v4011_v22 = vrot.slane %v4009_v63, 1  ;;  %v4014_v0 = vsub.f32 %v3985_v48, %v4009_v63 }
0x1177   : > { %v4015_v3 = vsub.f32 %v3987_v4, %v4011_v22  ;;  %v4016_v42 = vmul.f32 %v4014_v0, %v4014_v0 }
0x1179   : > { %v4017_v7 = vmul.f32 %v4015_v3, %v4015_v3 }
0x117b   : > { %v4020_v19 = vrot.slane %v4017_v7, 7 }
0x117d   : > { %v4021_v5 = vsel %vm4002_vm8, %v4020_v19, %v4016_v42 }
0x117e   : > { %v4023_v25 = vsel %vm4005_vm9, %v4021_v5, 0.0 }
0x117f   : > { %4024 = vadd.xlane.f32.xlu0 %v4023_v25 }
0x120c   : > { %v4025_v8 = vpop.xlane.xlu0 %4024 }
0x120d   : > { %v4026_v12 = vmul.f32 0.0078125, %v4025_v8 }
0x120f   : > { %v4027_v55 = vadd.f32 1e-05, %v4026_v12 }
0x1211   : > { %5243 = vrsqrt.f32 %v4027_v55 }
0x121b   : > { %v5244_v10 = vpop.eup %5243 }
0x121c   : > { %v4030_v13 = vrot.slane %v5244_v10, 1  ;;  %v4033_v14 = vmul.f32 %v5244_v10, %v4014_v0 }
0x121e   : > { %v4034_v43 = vmul.f32 %v4030_v13, %v4015_v3  ;;  %v4041_v17 = vmul.f32 %v4437_v16, %v4033_v14 }
0x1220   : > { %v4042_v56 = vmul.f32 %v4437_v16, %v4034_v43  ;;  %v4049_v18 = vadd.f32 %v4438_v20, %v4041_v17 }
0x1222   : > { %v4050_v57 = vadd.f32 %v4438_v20, %v4042_v56 }
0x1224   : > { %v4053_v23 = vrot.slane %v4050_v57, 7 }
0x1226   : > { %v4054_v24 = vsel %vm4002_vm8, %v4053_v23, %v4049_v18 }
0x1227   : > { %4056 = vst [vmem:[%s5645_s24] sm:$0x3] %v4054_v24 }
0x1228 PF: > { %s6223_s9 = sld [smem:[#allocation11_spill]]  ;;  %s6224_s28 = sld [smem:[#allocation10_spill]] }
0x1229   : > { %s6225_s26 = sld [smem:[#allocation12_spill]]  ;;  %s6226_s30 = sld [smem:[#allocation13_spill]] }
0x122a   : > { %s6227_s27 = smov %s5367_s29 }
0x122e   : > { %s30_s0 = sadd.s32 1, %s6223_s9  }
0x122f   : > { %p27_p10 = scmp.ge.s32.totalorder %s30_s0, 6   ;;  %s6228_s29 = smov %s6225_s26 }
0x1231   :  { %29 = sbr.rel (!%p27_p10) target bundleno = 18 (0x12), region = 170 }
0x1238   :  { %4076 = vsyncpa [#allocation4], 1 }
0x1239   :  { %4078 = vsyncpa [#allocation4 + $0x1], 1 }
0x123a   :  { %4079 = vsyncpa [#allocation6], 1 }

</bundles_post_ra>
